<compile_context>
chip_gen: v7x
topology: tpu7x:2x2x1
jax: 0.10.0
libtpu: 0.0.40
codegen_flags: <defaults>
</compile_context>

<pallas_src>
import functools

import jax
import jax.numpy as jnp
from jax.experimental import pallas as pl
from jax.experimental.pallas import tpu as pltpu


def se_block_kernel(x_ref, w1_ref, b1_ref, w2_ref, b2_ref, o_ref, *, inv_hw):
    """One grid step: Bt batch elements.

    x_ref/o_ref : (Bt, C, HW_pad)       (spatial padding, if any, is zeros)
    w1_ref      : (hidden, C)   b1_ref : (1, hidden)
    w2_ref      : (C, hidden)   b2_ref : (1, C)
    """
    # --- squeeze: global average pool over spatial dims -> (Bt, C) ----------
    # Padding columns are zeros, so the sum is exact; divide by the true H*W.
    y = jnp.sum(x_ref[...].astype(jnp.float32), axis=-1) * inv_hw

    # --- excitation MLP: tiny matvecs, keep them on the VPU (not the MXU) ---
    # fc1: contract over C -> (Bt, hidden), then ReLU.
    w1 = w1_ref[...].astype(jnp.float32)
    h = jnp.sum(y[:, None, :] * w1[None, :, :], axis=-1)
    h = jnp.maximum(h + b1_ref[...].astype(jnp.float32), 0.0)

    # fc2: contract over hidden -> (Bt, C), then sigmoid.
    w2 = w2_ref[...].astype(jnp.float32)
    s = jnp.sum(h[:, None, :] * w2[None, :, :], axis=-1)
    s = jax.nn.sigmoid(s + b2_ref[...].astype(jnp.float32))

    # --- excite: re-read the tile, rescale in the input dtype ---------------
    scale = s.astype(x_ref.dtype)[:, :, None]        # (Bt, C, 1) lane-broadcast
    o_ref[...] = (x_ref[...] * scale).astype(o_ref.dtype)


def _choose_batch_tile(batch, bytes_per_batch, target_bytes):
    """Largest Bt dividing `batch` with Bt*bytes <= target and >=2 grid steps."""
    best = 1
    for bt in range(1, batch + 1):
        if batch % bt:
            continue
        if bt * bytes_per_batch > target_bytes:
            break
        if batch // bt >= 2 or batch == 1:
            best = bt
    return best


def se_block(x, w1, b1, w2, b2, *, target_block_bytes=2 << 20):
    """x: (B, C, H, W) NCHW. Returns x * sigmoid(fc2(relu(fc1(gap(x)))))."""
    B, C, H, W = x.shape
    HW = H * W
    hidden = w1.shape[0]

    # Lane-dense spatial axis: pad flattened H*W up to a multiple of 128 so
    # the output store path uses unmasked full-lane vst (crop afterwards).
    HW_pad = ((HW + 127) // 128) * 128
    x_flat = x.reshape(B, C, HW)
    if HW_pad != HW:
        x_flat = jnp.pad(x_flat, ((0, 0), (0, 0), (0, HW_pad - HW)))

    # Batch tiling: target ~MiB-scale blocks, but keep the grid length >= 2.
    bytes_per_b = C * HW_pad * x.dtype.itemsize
    Bt = _choose_batch_tile(B, bytes_per_b, target_block_bytes)
    grid = (B // Bt,)
    block_bytes = Bt * bytes_per_b
    # Double-buffered in + out plus headroom; safe on v5e/v6e (128 MiB) and
    # v7x (64 MiB physical).
    vmem_limit = int(min(48 << 20, max(16 << 20, 6 * block_bytes)))

    kernel = functools.partial(se_block_kernel, inv_hw=float(1.0 / HW))

    out_flat = pl.pallas_call(
        kernel,
        out_shape=jax.ShapeDtypeStruct((B, C, HW_pad), x.dtype),
        grid=grid,
        in_specs=[
            pl.BlockSpec((Bt, C, HW_pad), lambda i: (i, 0, 0)),   # x
            pl.BlockSpec((hidden, C), lambda i: (0, 0)),          # w1
            pl.BlockSpec((1, hidden), lambda i: (0, 0)),          # b1
            pl.BlockSpec((C, hidden), lambda i: (0, 0)),          # w2
            pl.BlockSpec((1, C), lambda i: (0, 0)),               # b2
        ],
        out_specs=pl.BlockSpec((Bt, C, HW_pad), lambda i: (i, 0, 0)),
        compiler_params=pltpu.CompilerParams(
            dimension_semantics=("parallel",),
            vmem_limit_bytes=vmem_limit),
    )(x_flat, w1, b1.reshape(1, hidden), w2, b2.reshape(1, C))

    if HW_pad != HW:
        out_flat = out_flat[:, :, :HW]
    return out_flat.reshape(B, C, H, W)


def se_block_ref(x, w1, b1, w2, b2):
    # Pure-JAX reference of the PyTorch forward.
    y = jnp.mean(x, axis=(2, 3))                      # (B, C)
    y = jnp.maximum(y @ w1.T + b1, 0.0)               # (B, C//r)
    y = jax.nn.sigmoid(y @ w2.T + b2)                 # (B, C)
    return x * y[:, :, None, None]


if __name__ == "__main__":
    inchannel, ratio = 64, 16
    hidden = inchannel // ratio

    key = jax.random.PRNGKey(0)
    kx, k1, k2, k3, k4, kx2 = jax.random.split(key, 6)

    # Torch Linear stores weight as (out, in).
    w1 = jax.random.normal(k1, (hidden, inchannel), dtype=jnp.float32) * 0.1
    b1 = jax.random.normal(k2, (hidden,), dtype=jnp.float32) * 0.1
    w2 = jax.random.normal(k3, (inchannel, hidden), dtype=jnp.float32) * 0.1
    b2 = jax.random.normal(k4, (inchannel,), dtype=jnp.float32) * 0.1

    # Case 1: lane-aligned spatial (H*W multiple of 128), grid of 2 steps.
    B, H, W = 2, 16, 16
    x = jax.random.normal(kx, (B, inchannel, H, W), dtype=jnp.float32)
    out = jax.block_until_ready(se_block(x, w1, b1, w2, b2))
    ref = se_block_ref(x, w1, b1, w2, b2)
    assert jnp.allclose(out, ref, atol=1e-5, rtol=1e-5)

    # Case 2: non-128-multiple spatial (padded in the wrapper) and Bt > 1.
    B2, H2, W2 = 4, 10, 10
    x2 = jax.random.normal(kx2, (B2, inchannel, H2, W2), dtype=jnp.float32)
    out2 = jax.block_until_ready(se_block(x2, w1, b1, w2, b2))
    ref2 = se_block_ref(x2, w1, b1, w2, b2)
    assert jnp.allclose(out2, ref2, atol=1e-5, rtol=1e-5)

    print("KERNEL_OK")
</pallas_src>

<mosaic_0001>
module attributes {stable_mosaic.version = 11 : i64} {
  func.func @se_block_kernel(%arg0: i32, %arg1: memref<1x64x256xf32, #tpu.memory_space<vmem>>, %arg2: memref<4x64xf32, #tpu.memory_space<vmem>>, %arg3: memref<1x4xf32, #tpu.memory_space<vmem>>, %arg4: memref<64x4xf32, #tpu.memory_space<vmem>>, %arg5: memref<1x64xf32, #tpu.memory_space<vmem>>, %arg6: memref<1x64x256xf32, #tpu.memory_space<vmem>>) attributes {dimension_semantics = [#tpu.dimension_semantics<parallel>], iteration_bounds = array<i64: 2>, scalar_prefetch = 0 : i64, scratch_operands = 0 : i64, tpu.core_type = #tpu.core_type<tc>, window_params = [{transform_indices = @transform_0, window_bounds = array<i64: 1, 64, 256>}, {pipeline_mode = #tpu.pipeline_mode<synchronous>, transform_indices = @transform_1, window_bounds = array<i64: 4, 64>}, {pipeline_mode = #tpu.pipeline_mode<synchronous>, transform_indices = @transform_2, window_bounds = array<i64: 1, 4>}, {pipeline_mode = #tpu.pipeline_mode<synchronous>, transform_indices = @transform_3, window_bounds = array<i64: 64, 4>}, {pipeline_mode = #tpu.pipeline_mode<synchronous>, transform_indices = @transform_4, window_bounds = array<i64: 1, 64>}, {transform_indices = @transform_5, window_bounds = array<i64: 1, 64, 256>}]} {
    %c0 = arith.constant 0 : index
    %c0_0 = arith.constant 0 : index
    %c0_1 = arith.constant 0 : index
    %0 = vector.load %arg1[%c0, %c0_0, %c0_1] : memref<1x64x256xf32, #tpu.memory_space<vmem>>, vector<1x64x256xf32>
    %cst = arith.constant dense<0.000000e+00> : vector<1x64xf32>
    %1 = vector.multi_reduction <add>, %0, %cst [2] : vector<1x64x256xf32> to vector<1x64xf32>
    %cst_2 = arith.constant 3.906250e-03 : f32
    %2 = vector.broadcast %cst_2 : f32 to vector<1x64xf32>
    %3 = arith.mulf %1, %2 : vector<1x64xf32>
    %c0_3 = arith.constant 0 : index
    %c0_4 = arith.constant 0 : index
    %4 = vector.load %arg2[%c0_3, %c0_4] : memref<4x64xf32, #tpu.memory_space<vmem>>, vector<4x64xf32>
    %5 = vector.shape_cast %3 : vector<1x64xf32> to vector<1x1x64xf32>
    %6 = vector.shape_cast %4 : vector<4x64xf32> to vector<1x4x64xf32>
    %7 = vector.broadcast %5 : vector<1x1x64xf32> to vector<1x4x64xf32>
    %8 = arith.mulf %7, %6 : vector<1x4x64xf32>
    %cst_5 = arith.constant dense<0.000000e+00> : vector<1x4xf32>
    %9 = vector.multi_reduction <add>, %8, %cst_5 [2] : vector<1x4x64xf32> to vector<1x4xf32>
    %c0_6 = arith.constant 0 : index
    %c0_7 = arith.constant 0 : index
    %10 = vector.load %arg3[%c0_6, %c0_7] : memref<1x4xf32, #tpu.memory_space<vmem>>, vector<1x4xf32>
    %11 = arith.addf %9, %10 : vector<1x4xf32>
    %cst_8 = arith.constant 0.000000e+00 : f32
    %12 = vector.broadcast %cst_8 : f32 to vector<1x4xf32>
    %13 = arith.maximumf %11, %12 : vector<1x4xf32>
    %c0_9 = arith.constant 0 : index
    %c0_10 = arith.constant 0 : index
    %14 = vector.load %arg4[%c0_9, %c0_10] : memref<64x4xf32, #tpu.memory_space<vmem>>, vector<64x4xf32>
    %15 = vector.shape_cast %13 : vector<1x4xf32> to vector<1x1x4xf32>
    %16 = vector.shape_cast %14 : vector<64x4xf32> to vector<1x64x4xf32>
    %17 = vector.broadcast %15 : vector<1x1x4xf32> to vector<1x64x4xf32>
    %18 = arith.mulf %17, %16 : vector<1x64x4xf32>
    %cst_11 = arith.constant dense<0.000000e+00> : vector<1x64xf32>
    %19 = vector.multi_reduction <add>, %18, %cst_11 [2] : vector<1x64x4xf32> to vector<1x64xf32>
    %c0_12 = arith.constant 0 : index
    %c0_13 = arith.constant 0 : index
    %20 = vector.load %arg5[%c0_12, %c0_13] : memref<1x64xf32, #tpu.memory_space<vmem>>, vector<1x64xf32>
    %21 = arith.addf %19, %20 : vector<1x64xf32>
    %22 = arith.negf %21 : vector<1x64xf32>
    %23 = math.exp %22 : vector<1x64xf32>
    %cst_14 = arith.constant 1.000000e+00 : f32
    %24 = vector.broadcast %cst_14 : f32 to vector<1x64xf32>
    %25 = arith.addf %24, %23 : vector<1x64xf32>
    %26 = arith.divf %24, %25 : vector<1x64xf32>
    %27 = vector.shape_cast %26 : vector<1x64xf32> to vector<1x64x1xf32>
    %c0_15 = arith.constant 0 : index
    %c0_16 = arith.constant 0 : index
    %c0_17 = arith.constant 0 : index
    %28 = vector.load %arg1[%c0_15, %c0_16, %c0_17] : memref<1x64x256xf32, #tpu.memory_space<vmem>>, vector<1x64x256xf32>
    %29 = vector.broadcast %27 : vector<1x64x1xf32> to vector<1x64x256xf32>
    %30 = arith.mulf %28, %29 : vector<1x64x256xf32>
    %c0_18 = arith.constant 0 : index
    %c0_19 = arith.constant 0 : index
    %c0_20 = arith.constant 0 : index
    %31 = vector.load %arg6[%c0_18, %c0_19, %c0_20] : memref<1x64x256xf32, #tpu.memory_space<vmem>>, vector<1x64x256xf32>
    tpu.vector_store %arg6[%c0_18, %c0_19, %c0_20], %30 {strides = array<i32>} : memref<1x64x256xf32, #tpu.memory_space<vmem>>, vector<1x64x256xf32>,
    return
  }
  func.func @transform_0(%arg0: i32) -> (i32, i32, i32) {
    %c0_i32 = arith.constant 0 : i32
    %c0_i32_0 = arith.constant 0 : i32
    %c0_i32_1 = arith.constant 0 : i32
    return %arg0, %c0_i32, %c0_i32_0 : i32, i32, i32
  }
  func.func @transform_1(%arg0: i32) -> (i32, i32) {
    %c0_i32 = arith.constant 0 : i32
    %c0_i32_0 = arith.constant 0 : i32
    %c0_i32_1 = arith.constant 0 : i32
    return %c0_i32, %c0_i32_0 : i32, i32
  }
  func.func @transform_2(%arg0: i32) -> (i32, i32) {
    %c0_i32 = arith.constant 0 : i32
    %c0_i32_0 = arith.constant 0 : i32
    %c0_i32_1 = arith.constant 0 : i32
    return %c0_i32, %c0_i32_0 : i32, i32
  }
  func.func @transform_3(%arg0: i32) -> (i32, i32) {
    %c0_i32 = arith.constant 0 : i32
    %c0_i32_0 = arith.constant 0 : i32
    %c0_i32_1 = arith.constant 0 : i32
    return %c0_i32, %c0_i32_0 : i32, i32
  }
  func.func @transform_4(%arg0: i32) -> (i32, i32) {
    %c0_i32 = arith.constant 0 : i32
    %c0_i32_0 = arith.constant 0 : i32
    %c0_i32_1 = arith.constant 0 : i32
    return %c0_i32, %c0_i32_0 : i32, i32
  }
  func.func @transform_5(%arg0: i32) -> (i32, i32, i32) {
    %c0_i32 = arith.constant 0 : i32
    %c0_i32_0 = arith.constant 0 : i32
    %c0_i32_1 = arith.constant 0 : i32
    return %arg0, %c0_i32, %c0_i32_0 : i32, i32, i32
  }
}

</mosaic_0001>

<bundles_post_ra>
// kernel: tpu_custom_call.1
= control target key start
LH: loop header
LB: loop body
LE: loop exit
PB: predicated region body
PF: predicated region fallthrough
CT: control target
= control target key end

     0   :  { %10 = vsyncpa [#allocation3], 0  ;;  %s3469_s0 = inlined_call_operand.hbm [shape: f32[2,64,256], index: 0, kind: input, shape index: {}]   ;;  %s3470_s1 = inlined_call_operand.vmem [shape: f32[4,64], index: 1, kind: input, shape index: {}]   ;;  %s3471_s2 = inlined_call_operand.vmem [shape: f32[1,4], index: 2, kind: input, shape index: {}]   ;;  %s3472_s3 = inlined_call_operand.vmem [shape: f32[64,4], index: 3, kind: input, shape index: {}]   ;;  %s3473_s4 = inlined_call_operand.vmem [shape: f32[1,64], index: 4, kind: input, shape index: {}]   ;;  %s3474_s5 = inlined_call_operand.hbm [shape: f32[2,64,256], index: 5, kind: output, shape index: {}]  }
   0x1   :  { %12 = vsyncpa [#allocation3 + $0x1], 0 }
   0x2   :  { %13 = vsyncpa [#allocation4], 0 }
   0x3   :  { %15 = vsyncpa [#allocation4 + $0x1], 0  ;;  %s2539_s18 = smov 0   ;;  %s2541_s19 = smov 0  }
   0x4   :  { %s2543_s20 = smov 0   ;;  %s2545_s21 = smov 0  }
   0x5 LB: > { %s2560_s22 = sadd.s32 4294967295, %s2500_s21   ;;  %s2277_s23 = sadd.s32 4294967294, %s2500_s21   ;;  %s2500_s21 = sphi %s2545_s21, %s3487_s21   ;;  %s2496_s20 = sphi %s2543_s20, %s3486_s20   ;;  %s2492_s19 = sphi %s2541_s19, %s3485_s19   ;;  %s2488_s18 = sphi %s2539_s18, %s3484_s18  }
   0x6   : > { %s2564_s24 = sadd.s32 1, %s2500_s21   ;;  %s28_s25 = sadd.s32 1, %s2496_s20 }
   0x7   : > { %s25_s26 = ssub.s32 %s2500_s21, %s2564_s24  ;;  %p35_p0 = scmp.ne.s32.totalorder %s2496_s20, %s2492_s19 }
   0x8   : > { %p26_p1 = scmp.eq.s32.totalorder %s25_s26, 0  ;;  %p36_p2 = scmp.eq.s32.totalorder %s2500_s21, 0 }
   0x9   : > { %p41_p3 = scmp.ne.s32.totalorder %s2492_s19, %s2488_s18  ;;  %p42_p4 = scmp.eq.s32.totalorder %s2560_s22, 0 }
   0xa   : > { %s2576_s27 = scalar_select %p26_p1, %s2496_s20, %s28_s25  }
   0xb   : > { %p2578_p5 = por %p36_p2, %p35_p0  ;;  %p2582_p6 = por %p42_p4, %p41_p3 }
   0xc   : > { %p149_p7 = scmp.eq.s32.totalorder %s2560_s22, 1  ;;  %p155_p8 = scmp.eq.s32.totalorder %s2277_s23, 1 }
   0xd   : > { %p2315_p10 = scmp.lt.s32.totalorder %s2500_s21, 2  ;;  %s187_s7 = sand.u32 1, %s2496_s20  }
   0xe   : > { %p2589_p11 = por %p149_p7, %p35_p0  ;;  %p2593_p12 = por %p155_p8, %p41_p3 }
   0xf   : > { %s2301_s8 = sshll.u32 %s2500_s21, 11  ;;  %s2280_s9 = sshll.u32 %s187_s7, 7 }
  0x10   : > { %s3478_s30 = scalar_select %p2589_p11, 1, 0 }
  0x11   : > { %s3479_s6 = scalar_select %p2593_p12, 1, 0 }
  0x12   : > { %s2602_s12 = scalar_lea.hbm %s3469_s0, %s2301_s8  ;;  %s191_s13 = scalar_lea.vmem [#allocation2], %s2280_s9 }
  0x13   : > { %s198_s14 = sshll.u32 %s191_s13, 4  ;;  %p2606_p13 = pnand %p2315_p10, %p2578_p5  ;;  %s2610_s14 = int_to_ptr.vmem [resolvable:$true] %s198_s14 }
  0x14   : > { %s2612_s16 = scalar_lea.sflag [#allocation3], %s187_s7  ;;  %s2404_s17 = scalar_lea.hbm %s2602_s12, 2048 }
  0x15   : > { %p2405_p0 = scmp.ne.s32.totalorder %s2602_s12, %s2404_s17  ;;  %p2406_p1 = pneg %p2606_p13 }
  0x16   : > { %s2409_s26 = scalar_lea.hbm %s3469_s0, 4096  ;;  %p2410_p4 = scmp.lt.u32.totalorder %s2602_s12, %s3469_s0 }
  0x17   : > { %p2407_p2 = pnand %p2406_p1, %p2405_p0  ;;  %p2411_p5 = scmp.lt.u32.totalorder %s2409_s26, %s2404_s17 }
  0x18   : > { %p2413_p8 = scmp.lt.u32.totalorder %s2404_s17, %s2602_s12 }
  0x19   : > { %p2408_p3 = pneg %p2407_p2  ;;  %p2412_p7 = por %p2411_p5, %p2410_p4 }
  0x1b   : > { %p2414_p10 = por %p2413_p8, %p2412_p7 }
  0x1d   : > { %p2415_p9 = pnand %p2414_p10, %p2408_p3 }
  0x1f   : > { %2418 = shalt.err (!%p2415_p9)
}
  0x20   : > { %s2419_s7 = scalar_lea.vmem %s2610_s14, 2048  ;;  %s2502_s9 = smov [#allocation2]  }
  0x21   : > { %p2420_p0 = scmp.ne.s32.totalorder %s2610_s14, %s2419_s7  ;;  %s2424_s10 = sshll.u32 %s2502_s9, 4  ;;  %s2425_s10 = int_to_ptr.vmem [resolvable:$false] %s2424_s10 }
  0x22   : > { %s2426_s11 = scalar_lea.vmem %s2425_s10, 4096  ;;  %p2427_p11 = scmp.lt.s32.totalorder %s2610_s14, %s2425_s10 }
  0x23   : > { %p2422_p2 = pnand %p2420_p0, %p2406_p1  ;;  %p2428_p4 = scmp.lt.s32.totalorder %s2426_s11, %s2419_s7 }
  0x25   : > { %p2423_p12 = pneg %p2422_p2  ;;  %p2429_p5 = por %p2428_p4, %p2427_p11 }
  0x27   : > { %p2430_p7 = pnand %p2429_p5, %p2423_p12 }
  0x29   : > { %2433 = shalt.err (!%p2430_p7)
}
  0x2a   : > { %s2503_s13 = smov 256   ;;  %s2504_s17 = smov 16  }
  0x2b   : > { %2310 = dma.hbm_to_vmem [thread:$0]  (!%p2606_p13), %s2602_s12, 2048, %s2610_s14, %s2612_s16, %s2503_s13, %s2503_s13, %s2504_s17  }
  0x2c   : > { %p2283_p9 = scmp.ge.s32.totalorder %s2500_s21, 1  ;;  %p206_p1 = scmp.lt.s32.totalorder %s2500_s21, 3 }
  0x2e   : > { %p207_p3 = pnand %p2283_p9, %p206_p1 }
  0x2f   : > { %s2643_s23 = sand.u32 (!%p207_p3), 1, %s2492_s19  }
  0x30   : > { %210 = sbr.rel (%p207_p3) target bundleno = 1140 (0x474), region = 40  ;;  %s2284_s25 = sshll.u32 (!%p207_p3), %s2643_s23, 7 }
  0x31   : > { %s213_s26 = scalar_lea.sflag (!%p207_p3), [#allocation3], %s2643_s23  ;;  %s2649_s28 = scalar_lea.vmem (!%p207_p3), [#allocation2], %s2284_s25 }
  0x37   : > { %2479 = dma.done.wait (%p2582_p6), %s213_s26, 2048  }
  0x38   : > { %2481 = vsyncadd (%p2582_p6), %s213_s26, 4294965248  ;;  %v247_v0 = vld [vmem:[%s2649_s28 + $0x20] sm:$0xff]  ;;  %v248_v1 = vld [vmem:[%s2649_s28 + $0x28] sm:$0xff]  ;;  %v293_v24 = vlaneseq  ;;  %v2505_v29 = vmov 0   ;;  %vm636_vm0 = vcmask 130112   ;;  %vm643_vm1 = vcmask 195712  }
  0x39   : > { %v243_v2 = vld [vmem:[%s2649_s28] sm:$0xff]  ;;  %v265_v3 = vadd.f32 %v248_v1, %v247_v0  ;;  %v244_v4 = vld [vmem:[%s2649_s28 + $0x8] sm:$0xff]  ;;  %v249_v5 = vld [vmem:[%s2649_s28 + $0x30] sm:$0xff]  ;;  %2355 = vset.pattern.permute.xlu1 %v2505_v29  ;;  %2354 = vset.pattern.permute.xlu0 %v2505_v29  ;;  %vm650_vm2 = vcmask 261312   ;;  %vm657_vm3 = vcmask 326912   ;;  %vm664_vm4 = vcmask 392512  }
  0x3a   : > { %v250_v6 = vld [vmem:[%s2649_s28 + $0x38] sm:$0xff]  ;;  %v259_v7 = vadd.f32 %v244_v4, %v243_v2  ;;  %v245_v8 = vld [vmem:[%s2649_s28 + $0x10] sm:$0xff]  ;;  %v251_v14 = vld [vmem:[%s2649_s28 + $0x40] sm:$0xff]  ;;  %v2672_v25 = vshrl.u32 %v293_v24, 7  ;;  %vm671_vm5 = vcmask 458112   ;;  %vm678_vm6 = vcmask 523712  }
  0x3b   : > { %v246_v9 = vld [vmem:[%s2649_s28 + $0x18] sm:$0xff]  ;;  %266 = vadd.xlane.f32.xlu1 %v265_v3  ;;  %v268_v10 = vadd.f32 %v250_v6, %v249_v5  ;;  %v253_v12 = vld [vmem:[%s2649_s28 + $0x50] sm:$0xff]  ;;  %v252_v15 = vld [vmem:[%s2649_s28 + $0x48] sm:$0xff]  ;;  %vm797_vm7 = vcmask 1041409   ;;  %vm799_vm8 = vcmask 1042434   ;;  %vm801_vm9 = vcmask 1043459  }
  0x3c   : > { %260 = vadd.xlane.f32.xlu0 %v259_v7  ;;  %v262_v11 = vadd.f32 %v246_v9, %v245_v8  ;;  %v254_v13 = vld [vmem:[%s2649_s28 + $0x58] sm:$0xff]  ;;  %v271_v17 = vadd.f32 %v252_v15, %v251_v14  ;;  %v257_v18 = vld [vmem:[%s2649_s28 + $0x70] sm:$0xff]  ;;  %v255_v20 = vld [vmem:[%s2649_s28 + $0x60] sm:$0xff]  ;;  %v2675_v26 = vsub.s32 0, %v2672_v25  ;;  %v2682_v30 = vsub.s32 1, %v2672_v25  ;;  %s3386_s11 = scalar_lea.vmem [#allocation5], %s2284_s25 }
  0x3d   : > { %v274_v16 = vadd.f32 %v254_v13, %v253_v12  ;;  %v258_v19 = vld [vmem:[%s2649_s28 + $0x78] sm:$0xff]  ;;  %v256_v21 = vld [vmem:[%s2649_s28 + $0x68] sm:$0xff]  ;;  %v291_v27 = vld [vmem:[%s3470_s1] sm:$0xf]  ;;  %v2686_v32 = vsub.s32 2, %v2672_v25  ;;  %v2690_v34 = vsub.s32 3, %v2672_v25 }
  0x3e   : > { %v280_v22 = vadd.f32 %v258_v19, %v257_v18  ;;  %v277_v23 = vadd.f32 %v256_v21, %v255_v20  ;;  %v296_v28 = vrot.slane %v291_v27, %v2675_v26  ;;  %v331_v31 = vrot.slane %v291_v27, %v2682_v30  ;;  %s2302_s25 = sshll.u32 %s2560_s22, 11  ;;  %s2204_s13 = sshll.u32 %s3386_s11, 4  ;;  %s3419_s13 = int_to_ptr.vmem [resolvable:$true] %s2204_s13 }
  0x3f   : > { %269 = vadd.xlane.f32.xlu1 %v268_v10  ;;  %v366_v33 = vrot.slane %v291_v27, %v2686_v32  ;;  %v401_v35 = vrot.slane %v291_v27, %v2690_v34  ;;  %vm804_vm10 = vcmask 519168   ;;  %vm1927_vm11 = vcmask 1044484   ;;  %s3417_s29 = scalar_lea.hbm %s3474_s5, %s2302_s25  ;;  %s2191_s22 = scalar_lea.sflag [#allocation4], %s2643_s23 }
  0x40   : > { %263 = vadd.xlane.f32.xlu0 %v262_v11  ;;  %vm1929_vm12 = vcmask 1045509   ;;  %vm1931_vm13 = vcmask 1046534   ;;  %vm1933_vm14 = vcmask 1047559   ;;  %vm1992_vm15 = vcmask 31744   ;;  %s2434_s12 = scalar_lea.vmem %s3419_s13, 2048  ;;  %p3481_p11 = scmp.ne.s32.totalorder %s3478_s30, 0 }
  0x41   : > { %p2435_p6 = scmp.ne.s32.totalorder %s3419_s13, %s2434_s12  ;;  %s2506_s14 = smov [#allocation5]  }
  0x42   : > { %s2438_s15 = sshll.u32 %s2506_s14, 4  ;;  %s2439_s15 = int_to_ptr.vmem [resolvable:$false] %s2438_s15 }
  0x43   : > { %275 = vadd.xlane.f32.xlu1 %v274_v16  ;;  %p2436_p12 = pnand %p2435_p6, %p3481_p11  ;;  %s2440_s16 = scalar_lea.vmem %s2439_s15, 4096 }
  0x44   : > { %272 = vadd.xlane.f32.xlu0 %v271_v17  ;;  %p2441_p8 = scmp.lt.s32.totalorder %s3419_s13, %s2439_s15  ;;  %p2442_p10 = scmp.lt.s32.totalorder %s2440_s16, %s2434_s12 }
  0x45   : > { %p2437_p13 = pneg %p2436_p12 }
  0x46   : > { %p2443_p0 = por %p2442_p10, %p2441_p8 }
  0x47   : > { %281 = vadd.xlane.f32.xlu1 %v280_v22 }
  0x48   : > { %278 = vadd.xlane.f32.xlu0 %v277_v23  ;;  %p2444_p2 = pnand %p2443_p0, %p2437_p13 }
  0x58   : > { %302 = vbcast.lane.b32.xlu1 %v296_v28, 264 }
  0x5c   : > { %306 = vbcast.lane.b32.xlu1 %v296_v28, 272 }
  0x5e   : > { %298 = vbcast.lane.b32.xlu0 %v296_v28, 256 }
  0x60   : > { %310 = vbcast.lane.b32.xlu1 %v296_v28, 280 }
  0x62   : > { %314 = vbcast.lane.b32.xlu0 %v296_v28, 288 }
  0x64   : > { %318 = vbcast.lane.b32.xlu1 %v296_v28, 296 }
  0x66   : > { %322 = vbcast.lane.b32.xlu0 %v296_v28, 304 }
  0x68   : > { %326 = vbcast.lane.b32.xlu1 %v296_v28, 312 }
  0x6a   : > { %333 = vbcast.lane.b32.xlu0 %v331_v31, 256 }
  0x6c   : > { %337 = vbcast.lane.b32.xlu1 %v331_v31, 264 }
  0x6e   : > { %341 = vbcast.lane.b32.xlu0 %v331_v31, 272 }
  0x70   : > { %345 = vbcast.lane.b32.xlu1 %v331_v31, 280 }
  0x72   : > { %349 = vbcast.lane.b32.xlu0 %v331_v31, 288 }
  0x74   : > { %353 = vbcast.lane.b32.xlu1 %v331_v31, 296 }
  0x76   : > { %357 = vbcast.lane.b32.xlu0 %v331_v31, 304 }
  0x78   : > { %361 = vbcast.lane.b32.xlu1 %v331_v31, 312 }
  0x7a   : > { %368 = vbcast.lane.b32.xlu0 %v366_v33, 256 }
  0x7c   : > { %372 = vbcast.lane.b32.xlu1 %v366_v33, 264 }
  0x7e   : > { %376 = vbcast.lane.b32.xlu0 %v366_v33, 272 }
  0x80   : > { %380 = vbcast.lane.b32.xlu1 %v366_v33, 280 }
  0x82   : > { %384 = vbcast.lane.b32.xlu0 %v366_v33, 288 }
  0x84   : > { %388 = vbcast.lane.b32.xlu1 %v366_v33, 296 }
  0x86   : > { %392 = vbcast.lane.b32.xlu0 %v366_v33, 304 }
  0x88   : > { %396 = vbcast.lane.b32.xlu1 %v366_v33, 312 }
  0x8a   : > { %403 = vbcast.lane.b32.xlu0 %v401_v35, 256 }
  0x8c   : > { %407 = vbcast.lane.b32.xlu1 %v401_v35, 264 }
  0x8e   : > { %411 = vbcast.lane.b32.xlu0 %v401_v35, 272 }
  0x90   : > { %415 = vbcast.lane.b32.xlu1 %v401_v35, 280 }
  0x92   : > { %419 = vbcast.lane.b32.xlu0 %v401_v35, 288 }
  0x94   : > { %423 = vbcast.lane.b32.xlu1 %v401_v35, 296 }
  0x96   : > { %427 = vbcast.lane.b32.xlu0 %v401_v35, 304 }
  0x98   : > { %431 = vbcast.lane.b32.xlu1 %v401_v35, 312 }
  0xc8   : > { %v267_v36 = vpop.xlane.xlu1 %266 }
  0xc9   : > { %v261_v37 = vpop.xlane.xlu0 %260  ;;  %v2699_v50 = vmul.f32 0.00390625, %v267_v36 }
  0xca   : > { %v2695_v45 = vmul.f32 0.00390625, %v261_v37 }
  0xcc   : > { %v270_v38 = vpop.xlane.xlu1 %269 }
  0xcd   : > { %v264_v39 = vpop.xlane.xlu0 %263  ;;  %v2702_v54 = vmul.f32 0.00390625, %v270_v38 }
  0xce   : > { %v2693_v44 = vmul.f32 0.00390625, %v264_v39 }
  0xd0   : > { %v276_v40 = vpop.xlane.xlu1 %275 }
  0xd1   : > { %v273_v41 = vpop.xlane.xlu0 %272  ;;  %v2708_v60 = vmul.f32 0.00390625, %v276_v40 }
  0xd2   : > { %v2704_v55 = vmul.f32 0.00390625, %v273_v41 }
  0xd4   : > { %v282_v42 = vpop.xlane.xlu1 %281 }
  0xd5   : > { %v279_v43 = vpop.xlane.xlu0 %278  ;;  %v2714_v2 = vmul.f32 0.00390625, %v282_v42 }
  0xd6   : > { %v2710_v61 = vmul.f32 0.00390625, %v279_v43 }
  0xd8   : > { %v303_v46 = vpop.permute.xlu1 %302 }
  0xd9   : > { %v466_v47 = vmul.f32 %v303_v46, %v2693_v44  ;;  %v299_v48 = vpop.permute.xlu0 %298 }
  0xda   : > { %v465_v49 = vmul.f32 %v299_v48, %v2695_v45 }
  0xdb   : > { %533 = vperm.xlu1 %2355, %v466_v47  }
  0xdc   : > { %530 = vperm.xlu0 %2354, %v465_v49   ;;  %v307_v51 = vpop.permute.xlu1 %306 }
  0xdd   : > { %v467_v52 = vmul.f32 %v307_v51, %v2699_v50  ;;  %v315_v53 = vpop.permute.xlu0 %314 }
  0xde   : > { %v469_v57 = vmul.f32 %v315_v53, %v2704_v55 }
  0xdf   : > { %536 = vperm.xlu1 %2355, %v467_v52  }
  0xe0   : > { %v311_v56 = vpop.permute.xlu1 %310 }
  0xe1   : > { %v468_v58 = vmul.f32 %v311_v56, %v2702_v54  ;;  %v323_v59 = vpop.permute.xlu0 %322 }
  0xe2   : > { %v471_v63 = vmul.f32 %v323_v59, %v2710_v61 }
  0xe3   : > { %539 = vperm.xlu0 %2354, %v468_v58   ;;  %542 = vperm.xlu1 %2355, %v469_v57   ;;  %v2741_v58 = vld [vmem:[%s3472_s3 + $0x8] sm:$0xff] }
  0xe4   : > { %v319_v62 = vpop.permute.xlu1 %318 }
  0xe5   : > { %v470_v0 = vmul.f32 %v319_v62, %v2708_v60  ;;  %v334_v1 = vpop.permute.xlu0 %333 }
  0xe6   : > { %v473_v4 = vmul.f32 %v334_v1, %v2695_v45 }
  0xe7   : > { %545 = vperm.xlu0 %2354, %v470_v0   ;;  %548 = vperm.xlu1 %2355, %v471_v63   ;;  %v2762_v0 = vld [vmem:[%s3472_s3 + $0x10] sm:$0xff] }
  0xe8   : > { %v327_v3 = vpop.permute.xlu1 %326 }
  0xe9   : > { %v472_v5 = vmul.f32 %v327_v3, %v2714_v2  ;;  %v342_v6 = vpop.permute.xlu0 %341 }
  0xea   : > { %v475_v8 = vmul.f32 %v342_v6, %v2699_v50 }
  0xeb   : > { %551 = vperm.xlu0 %2354, %v472_v5   ;;  %554 = vperm.xlu1 %2355, %v473_v4   ;;  %v965_v4 = vrot.slane %v2762_v0, %v2686_v32  ;;  %v2771_v5 = vsub.s32 4, %v2672_v25 }
  0xec   : > { %v338_v7 = vpop.permute.xlu1 %337 }
  0xed   : > { %v474_v9 = vmul.f32 %v338_v7, %v2693_v44  ;;  %v350_v10 = vpop.permute.xlu0 %349  ;;  %v979_v7 = vrot.slane %v2762_v0, %v2771_v5 }
  0xee   : > { %v477_v12 = vmul.f32 %v350_v10, %v2704_v55  ;;  %v2782_v10 = vld [vmem:[%s3472_s3 + $0x18] sm:$0xff] }
  0xef   : > { %557 = vperm.xlu0 %2354, %v474_v9   ;;  %560 = vperm.xlu1 %2355, %v475_v8  }
  0xf0   : > { %v346_v11 = vpop.permute.xlu1 %345 }
  0xf1   : > { %v476_v13 = vmul.f32 %v346_v11, %v2702_v54  ;;  %v358_v14 = vpop.permute.xlu0 %357 }
  0xf2   : > { %v479_v16 = vmul.f32 %v358_v14, %v2710_v61 }
  0xf3   : > { %563 = vperm.xlu0 %2354, %v476_v13   ;;  %566 = vperm.xlu1 %2355, %v477_v12   ;;  %v1007_v12 = vrot.slane %v2782_v10, %v2675_v26  ;;  %v2788_v13 = vsub.s32 5, %v2672_v25 }
  0xf4   : > { %v354_v15 = vpop.permute.xlu1 %353 }
  0xf5   : > { %v478_v17 = vmul.f32 %v354_v15, %v2708_v60  ;;  %v369_v18 = vpop.permute.xlu0 %368  ;;  %v1021_v15 = vrot.slane %v2782_v10, %v2686_v32 }
  0xf6   : > { %v481_v20 = vmul.f32 %v369_v18, %v2695_v45  ;;  %v2797_v18 = vsub.s32 7, %v2672_v25 }
  0xf7   : > { %569 = vperm.xlu0 %2354, %v478_v17   ;;  %572 = vperm.xlu1 %2355, %v479_v16   ;;  %v1035_v17 = vrot.slane %v2782_v10, %v2771_v5 }
  0xf8   : > { %v362_v19 = vpop.permute.xlu1 %361 }
  0xf9   : > { %v480_v21 = vmul.f32 %v362_v19, %v2714_v2  ;;  %v377_v22 = vpop.permute.xlu0 %376 }
  0xfa   : > { %v483_v27 = vmul.f32 %v377_v22, %v2699_v50  ;;  %v902_v22 = vrot.slane %v2741_v58, %v2682_v30 }
  0xfb   : > { %575 = vperm.xlu0 %2354, %v480_v21   ;;  %578 = vperm.xlu1 %2355, %v481_v20   ;;  %v2805_v21 = vld [vmem:[%s3472_s3 + $0x20] sm:$0xff] }
  0xfc   : > { %v373_v23 = vpop.permute.xlu1 %372 }
  0xfd   : > { %v482_v28 = vmul.f32 %v373_v23, %v2693_v44  ;;  %v385_v29 = vpop.permute.xlu0 %384  ;;  %v1063_v23 = vrot.slane %v2805_v21, %v2675_v26 }
  0xfe   : > { %v485_v33 = vmul.f32 %v385_v29, %v2704_v55  ;;  %v916_v29 = vrot.slane %v2741_v58, %v2690_v34 }
  0xff   : > { %581 = vperm.xlu0 %2354, %v482_v28   ;;  %584 = vperm.xlu1 %2355, %v483_v27   ;;  %v909_v27 = vrot.slane %v2741_v58, %v2686_v32  ;;  %v1077_v28 = vrot.slane %v2805_v21, %v2686_v32 }
 0x100   : > { %v381_v31 = vpop.permute.xlu1 %380 }
 0x101   : > { %v484_v35 = vmul.f32 %v381_v31, %v2702_v54  ;;  %v393_v36 = vpop.permute.xlu0 %392  ;;  %v1091_v31 = vrot.slane %v2805_v21, %v2771_v5 }
 0x102   : > { %v487_v38 = vmul.f32 %v393_v36, %v2710_v61  ;;  %v2826_v36 = vld [vmem:[%s3472_s3 + $0x28] sm:$0xff] }
 0x103   : > { %587 = vperm.xlu0 %2354, %v484_v35   ;;  %590 = vperm.xlu1 %2355, %v485_v33   ;;  %v923_v33 = vrot.slane %v2741_v58, %v2771_v5 }
 0x104   : > { %v389_v37 = vpop.permute.xlu1 %388 }
 0x105   : > { %v486_v39 = vmul.f32 %v389_v37, %v2708_v60  ;;  %v404_v40 = vpop.permute.xlu0 %403  ;;  %v930_v37 = vrot.slane %v2741_v58, %v2788_v13 }
 0x106   : > { %v489_v42 = vmul.f32 %v404_v40, %v2695_v45  ;;  %v1133_v40 = vrot.slane %v2826_v36, %v2686_v32 }
 0x107   : > { %593 = vperm.xlu0 %2354, %v486_v39   ;;  %596 = vperm.xlu1 %2355, %v487_v38   ;;  %v1119_v38 = vrot.slane %v2826_v36, %v2675_v26  ;;  %v944_v39 = vrot.slane %v2741_v58, %v2797_v18 }
 0x108   : > { %v397_v41 = vpop.permute.xlu1 %396 }
 0x109   : > { %v488_v43 = vmul.f32 %v397_v41, %v2714_v2  ;;  %v412_v46 = vpop.permute.xlu0 %411  ;;  %v958_v41 = vrot.slane %v2762_v0, %v2682_v30 }
 0x10a   : > { %v491_v48 = vmul.f32 %v412_v46, %v2699_v50  ;;  %v972_v46 = vrot.slane %v2762_v0, %v2690_v34 }
 0x10b   : > { %599 = vperm.xlu0 %2354, %v488_v43   ;;  %602 = vperm.xlu1 %2355, %v489_v42   ;;  %v1147_v42 = vrot.slane %v2826_v36, %v2771_v5 }
 0x10c   : > { %v408_v47 = vpop.permute.xlu1 %407 }
 0x10d   : > { %v490_v49 = vmul.f32 %v408_v47, %v2693_v44  ;;  %v420_v51 = vpop.permute.xlu0 %419 }
 0x10e   : > { %v493_v53 = vmul.f32 %v420_v51, %v2704_v55  ;;  %v895_v55 = vrot.slane %v2741_v58, %v2675_v26 }
 0x10f   : > { %605 = vperm.xlu0 %2354, %v490_v49   ;;  %608 = vperm.xlu1 %2355, %v491_v48   ;;  %v2849_v48 = vld [vmem:[%s3472_s3 + $0x30] sm:$0xff] }
 0x110   : > { %v416_v52 = vpop.permute.xlu1 %415 }
 0x111   : > { %v492_v56 = vmul.f32 %v416_v52, %v2702_v54  ;;  %v428_v57 = vpop.permute.xlu0 %427  ;;  %v2748_v54 = vsub.s32 6, %v2672_v25  ;;  %v986_v52 = vrot.slane %v2762_v0, %v2788_v13 }
 0x112   : > { %v495_v50 = vmul.f32 %v428_v57, %v2710_v61  ;;  %v820_v61 = vld [vmem:[%s3472_s3] sm:$0xff] }
 0x113   : > { %611 = vperm.xlu0 %2354, %v492_v56   ;;  %614 = vperm.xlu1 %2355, %v493_v53   ;;  %v937_v63 = vrot.slane %v2741_v58, %v2748_v54  ;;  %v839_v1 = vrot.slane %v820_v61, %v2675_v26  ;;  %v846_v3 = vrot.slane %v820_v61, %v2682_v30 }
 0x114   : > { %v424_v45 = vpop.permute.xlu1 %423  ;;  %v853_v6 = vrot.slane %v820_v61, %v2686_v32  ;;  %v860_v8 = vrot.slane %v820_v61, %v2690_v34  ;;  %v993_v9 = vrot.slane %v2762_v0, %v2748_v54  ;;  %v867_v11 = vrot.slane %v820_v61, %v2771_v5 }
 0x115   : > { %v494_v44 = vmul.f32 %v424_v45, %v2708_v60  ;;  %v2286_v60 = vld [vmem:[%s3471_s2] ss:$0 sm:$0xff]  ;;  %v874_v14 = vrot.slane %v820_v61, %v2788_v13  ;;  %v881_v16 = vrot.slane %v820_v61, %v2748_v54  ;;  %v888_v19 = vrot.slane %v820_v61, %v2797_v18 }
 0x116   : > { %v1049_v20 = vrot.slane %v2782_v10, %v2748_v54  ;;  %v1105_v35 = vrot.slane %v2805_v21, %v2748_v54  ;;  %v1161_v47 = vrot.slane %v2826_v36, %v2748_v54  ;;  %v1175_v53 = vrot.slane %v2849_v48, %v2675_v26 }
 0x117   : > { %617 = vperm.xlu0 %2354, %v494_v44   ;;  %620 = vperm.xlu1 %2355, %v495_v50   ;;  %v1000_v45 = vrot.slane %v2762_v0, %v2797_v18  ;;  %v1189_v58 = vrot.slane %v2849_v48, %v2686_v32  ;;  %v1217_v61 = vrot.slane %v2849_v48, %v2748_v54 }
 0x118   : > { %v432_v59 = vpop.permute.xlu1 %431 }
 0x119   : > { %v496_v62 = vmul.f32 %v432_v59, %v2714_v2  ;;  %v951_v2 = vrot.slane %v2762_v0, %v2675_v26  ;;  %v1203_v59 = vrot.slane %v2849_v48, %v2771_v5 }
 0x11b   : > { %623 = vperm.xlu0 %2354, %v496_v62   ;;  %897 = vbcast.lane.b32.xlu1 %v895_v55, 256  ;;  %v1014_v55 = vrot.slane %v2782_v10, %v2682_v30 }
 0x11f   : > { %815 = vbcast.lane.b32.xlu0 %v2286_v60, 256  ;;  %939 = vbcast.lane.b32.xlu1 %v937_v63, 256  ;;  %v1028_v60 = vrot.slane %v2782_v10, %v2690_v34 }
 0x123   : > { %841 = vbcast.lane.b32.xlu0 %v839_v1, 256  ;;  %953 = vbcast.lane.b32.xlu1 %v951_v2, 256  ;;  %v1042_v2 = vrot.slane %v2782_v10, %v2788_v13 }
 0x127   : > { %848 = vbcast.lane.b32.xlu0 %v846_v3, 256  ;;  %967 = vbcast.lane.b32.xlu1 %v965_v4, 256 }
 0x12b   : > { %855 = vbcast.lane.b32.xlu0 %v853_v6, 256  ;;  %981 = vbcast.lane.b32.xlu1 %v979_v7, 256  ;;  %v1056_v6 = vrot.slane %v2782_v10, %v2797_v18 }
 0x12f   : > { %862 = vbcast.lane.b32.xlu0 %v860_v8, 256  ;;  %995 = vbcast.lane.b32.xlu1 %v993_v9, 256  ;;  %v1070_v9 = vrot.slane %v2805_v21, %v2682_v30 }
 0x133   : > { %869 = vbcast.lane.b32.xlu0 %v867_v11, 256  ;;  %1009 = vbcast.lane.b32.xlu1 %v1007_v12, 256 }
 0x137   : > { %876 = vbcast.lane.b32.xlu0 %v874_v14, 256  ;;  %1023 = vbcast.lane.b32.xlu1 %v1021_v15, 256  ;;  %v1084_v14 = vrot.slane %v2805_v21, %v2690_v34  ;;  %v626_v15 = vand.u32 127, %v293_v24 }
 0x13b   : > { %883 = vbcast.lane.b32.xlu0 %v881_v16, 256  ;;  %1037 = vbcast.lane.b32.xlu1 %v1035_v17, 256  ;;  %v1098_v17 = vrot.slane %v2805_v21, %v2788_v13 }
 0x13f   : > { %890 = vbcast.lane.b32.xlu0 %v888_v19, 256  ;;  %1051 = vbcast.lane.b32.xlu1 %v1049_v20, 256  ;;  %v631_v19 = vadd.s32 4294967288, %v626_v15 }
 0x141   : > { %v634_v24 = vsub.s32 %v631_v19, %v2672_v25 }
 0x143   : > { %904 = vbcast.lane.b32.xlu0 %v902_v22, 256  ;;  %1065 = vbcast.lane.b32.xlu1 %v1063_v23, 256  ;;  %v1112_v23 = vrot.slane %v2805_v21, %v2797_v18 }
 0x147   : > { %911 = vbcast.lane.b32.xlu0 %v909_v27, 256  ;;  %1079 = vbcast.lane.b32.xlu1 %v1077_v28, 256  ;;  %v638_v27 = vadd.s32 4294967280, %v626_v15  ;;  %v652_v28 = vadd.s32 4294967264, %v626_v15 }
 0x149   : > { %v641_v21 = vsub.s32 %v638_v27, %v2672_v25 }
 0x14b   : > { %918 = vbcast.lane.b32.xlu0 %v916_v29, 256  ;;  %1093 = vbcast.lane.b32.xlu1 %v1091_v31, 256  ;;  %v645_v29 = vadd.s32 4294967272, %v626_v15  ;;  %v666_v31 = vadd.s32 4294967248, %v626_v15 }
 0x14f   : > { %925 = vbcast.lane.b32.xlu0 %v923_v33, 256  ;;  %1107 = vbcast.lane.b32.xlu1 %v1105_v35, 256 }
 0x153   : > { %932 = vbcast.lane.b32.xlu0 %v930_v37, 256  ;;  %1121 = vbcast.lane.b32.xlu1 %v1119_v38, 256  ;;  %v2920_v37 = vsub.s32 %v626_v15, %v2672_v25  ;;  %v659_v38 = vadd.s32 4294967256, %v626_v15 }
 0x157   : > { %946 = vbcast.lane.b32.xlu0 %v944_v39, 256  ;;  %1135 = vbcast.lane.b32.xlu1 %v1133_v40, 256  ;;  %v1126_v39 = vrot.slane %v2826_v36, %v2682_v30  ;;  %v673_v40 = vadd.s32 4294967240, %v626_v15 }
 0x15a   : > { %v2840_v43 = vpop.permute.xlu1 %533 }
 0x15b   : > { %960 = vbcast.lane.b32.xlu0 %v958_v41, 256  ;;  %1149 = vbcast.lane.b32.xlu1 %v1147_v42, 256  ;;  %v2851_v49 = vpop.permute.xlu0 %530  ;;  %v2926_v42 = vsub.s32 %v652_v28, %v2672_v25 }
 0x15e   : > { %v2853_v51 = vpop.permute.xlu1 %536 }
 0x15f   : > { %974 = vbcast.lane.b32.xlu0 %v972_v46, 256  ;;  %1163 = vbcast.lane.b32.xlu1 %v1161_v47, 256  ;;  %v648_v46 = vsub.s32 %v645_v29, %v2672_v25  ;;  %v2930_v47 = vsub.s32 %v666_v31, %v2672_v25  ;;  %v642_v15 = vrot.slane %v2853_v51, %v641_v21 }
 0x162   : > { %v2859_v56 = vpop.permute.xlu1 %542  ;;  %v2861_v57 = vpop.permute.xlu0 %539 }
 0x163   : > { %988 = vbcast.lane.b32.xlu0 %v986_v52, 256  ;;  %1177 = vbcast.lane.b32.xlu1 %v1175_v53, 256  ;;  %v656_v31 = vrot.slane %v2859_v56, %v2926_v42 }
 0x166   : > { %v2867_v50 = vpop.permute.xlu1 %548  ;;  %v2869_v44 = vpop.permute.xlu0 %545 }
 0x167   : > { %1002 = vbcast.lane.b32.xlu0 %v1000_v45, 256  ;;  %1191 = vbcast.lane.b32.xlu1 %v1189_v58, 256 }
 0x16a   : > { %v2875_v62 = vpop.permute.xlu1 %554  ;;  %v2877_v63 = vpop.permute.xlu0 %551 }
 0x16b   : > { %1016 = vbcast.lane.b32.xlu0 %v1014_v55, 256  ;;  %1205 = vbcast.lane.b32.xlu1 %v1203_v59, 256  ;;  %v683_v52 = vrot.slane %v2875_v62, %v2920_v37  ;;  %v2937_v55 = vsub.s32 %v659_v38, %v2672_v25 }
 0x16e   : > { %v2883_v0 = vpop.permute.xlu1 %560  ;;  %v558_v1 = vpop.permute.xlu0 %557 }
 0x16f   : > { %1030 = vbcast.lane.b32.xlu0 %v1028_v60, 256  ;;  %1219 = vbcast.lane.b32.xlu1 %v1217_v61, 256  ;;  %v687_v41 = vrot.slane %v558_v1, %v634_v24  ;;  %v692_v59 = vrot.slane %v2883_v0, %v641_v21  ;;  %v1140_v60 = vrot.slane %v2826_v36, %v2690_v34 }
 0x170   : > { %v2943_v61 = vsub.s32 %v673_v40, %v2672_v25  ;;  %v649_v25 = vrot.slane %v2861_v57, %v648_v46 }
 0x171   : > { %v688_v1 = vsel %vm636_vm0, %v687_v41, %v683_v52 }
 0x172   : > { %v2887_v3 = vpop.permute.xlu1 %566  ;;  %v2889_v4 = vpop.permute.xlu0 %563 }
 0x173   : > { %1044 = vbcast.lane.b32.xlu0 %v1042_v2, 256  ;;  %v697_v62 = vrot.slane %v2889_v4, %v648_v46 }
 0x176   : > { %v2893_v7 = vpop.permute.xlu1 %572  ;;  %v2895_v8 = vpop.permute.xlu0 %569 }
 0x177   : > { %1058 = vbcast.lane.b32.xlu0 %v1056_v6, 256  ;;  %v635_v6 = vrot.slane %v2840_v43, %v634_v24  ;;  %v702_v43 = vrot.slane %v2887_v3, %v2926_v42  ;;  %v707_v57 = vrot.slane %v2895_v8, %v2937_v55  ;;  %v712_v52 = vrot.slane %v2893_v7, %v2930_v47 }
 0x17a   : > { %v579_v11 = vpop.permute.xlu1 %578  ;;  %v2899_v12 = vpop.permute.xlu0 %575 }
 0x17b   : > { %1072 = vbcast.lane.b32.xlu0 %v1070_v9, 256  ;;  %v722_v2 = vrot.slane %v579_v11, %v2920_v37  ;;  %v630_v9 = vrot.slane %v2851_v49, %v2920_v37  ;;  %v693_v49 = vsel %vm643_vm1, %v692_v59, %v688_v1 }
 0x17c   : > { %v698_v51 = vsel %vm650_vm2, %v697_v62, %v693_v49 }
 0x17d   : > { %v637_v27 = vsel %vm636_vm0, %v635_v6, %v630_v9  ;;  %v703_v40 = vsel %vm657_vm3, %v702_v43, %v698_v51 }
 0x17e   : > { %v2904_v16 = vpop.permute.xlu1 %584  ;;  %v582_v10 = vpop.permute.xlu0 %581  ;;  %v708_v56 = vsel %vm664_vm4, %v707_v57, %v703_v40 }
 0x17f   : > { %1086 = vbcast.lane.b32.xlu0 %v1084_v14, 256  ;;  %v726_v53 = vrot.slane %v582_v10, %v634_v24  ;;  %v731_v0 = vrot.slane %v2904_v16, %v641_v21  ;;  %v1154_v14 = vrot.slane %v2826_v36, %v2788_v13  ;;  %v713_v9 = vsel %vm671_vm5, %v712_v52, %v708_v56 }
 0x181   : > { %v727_v10 = vsel %vm636_vm0, %v726_v53, %v722_v2 }
 0x182   : > { %v2908_v20 = vpop.permute.xlu1 %590  ;;  %v2910_v22 = vpop.permute.xlu0 %587  ;;  %v732_v28 = vsel %vm643_vm1, %v731_v0, %v727_v10 }
 0x183   : > { %1100 = vbcast.lane.b32.xlu0 %v1098_v17, 256  ;;  %v736_v4 = vrot.slane %v2910_v22, %v648_v46  ;;  %v1168_v22 = vrot.slane %v2826_v36, %v2797_v18  ;;  %v741_v3 = vrot.slane %v2908_v20, %v2926_v42  ;;  %v663_v20 = vrot.slane %v2869_v44, %v2937_v55 }
 0x185   : > { %v737_v8 = vsel %vm650_vm2, %v736_v4, %v732_v28 }
 0x186   : > { %v2915_v33 = vpop.permute.xlu1 %596  ;;  %v2917_v35 = vpop.permute.xlu0 %593  ;;  %v742_v44 = vsel %vm657_vm3, %v741_v3, %v737_v8 }
 0x187   : > { %1114 = vbcast.lane.b32.xlu0 %v1112_v23, 256  ;;  %v746_v38 = vrot.slane %v2917_v35, %v2937_v55  ;;  %v751_v59 = vrot.slane %v2915_v33, %v2930_v47  ;;  %v677_v33 = vrot.slane %v2877_v63, %v2943_v61 }
 0x189   : > { %v747_v1 = vsel %vm664_vm4, %v746_v38, %v742_v44 }
 0x18a   : > { %v603_v45 = vpop.permute.xlu1 %602  ;;  %v2934_v58 = vpop.permute.xlu0 %599 }
 0x18b   : > { %1128 = vbcast.lane.b32.xlu0 %v1126_v39, 256  ;;  %v761_v16 = vrot.slane %v603_v45, %v2920_v37  ;;  %v717_v45 = vrot.slane %v2899_v12, %v2943_v61 }
 0x18e   : > { %v609_v17 = vpop.permute.xlu1 %608  ;;  %v606_v11 = vpop.permute.xlu0 %605 }
 0x18f   : > { %v765_v19 = vrot.slane %v606_v11, %v634_v24  ;;  %1142 = vbcast.lane.b32.xlu0 %v1140_v60, 256  ;;  %v770_v23 = vrot.slane %v609_v17, %v641_v21  ;;  %v644_v24 = vsel %vm643_vm1, %v642_v15, %v637_v27  ;;  %v670_v60 = vrot.slane %v2867_v50, %v2930_v47 }
 0x190   : > { %v651_v21 = vsel %vm650_vm2, %v649_v25, %v644_v24  ;;  %v1182_v50 = vrot.slane %v2849_v48, %v2682_v30  ;;  %v752_v15 = vsel %vm671_vm5, %v751_v59, %v747_v1 }
 0x191   : > { %v766_v29 = vsel %vm636_vm0, %v765_v19, %v761_v16  ;;  %v658_v7 = vsel %vm657_vm3, %v656_v31, %v651_v21 }
 0x192   : > { %v615_v36 = vpop.permute.xlu1 %614  ;;  %v612_v39 = vpop.permute.xlu0 %611  ;;  %v771_v35 = vsel %vm643_vm1, %v770_v23, %v766_v29  ;;  %v665_v12 = vsel %vm664_vm4, %v663_v20, %v658_v7  ;;  %v1224_v23 = vrot.slane %v2849_v48, %v2797_v18 }
 0x193   : > { %v775_v41 = vrot.slane %v612_v39, %v648_v46  ;;  %1156 = vbcast.lane.b32.xlu0 %v1154_v14, 256  ;;  %v780_v53 = vrot.slane %v615_v36, %v2926_v42  ;;  %v756_v42 = vrot.slane %v2934_v58, %v2943_v61  ;;  %v718_v14 = vsel %vm678_vm6, %v717_v45, %v713_v9 }
 0x194   : > { %v672_v63 = vsel %vm671_vm5, %v670_v60, %v665_v12 }
 0x195   : > { %v776_v46 = vsel %vm650_vm2, %v775_v41, %v771_v35  ;;  %v679_v4 = vsel %vm678_vm6, %v677_v33, %v672_v63 }
 0x196   : > { %v621_v62 = vpop.permute.xlu1 %620  ;;  %v618_v2 = vpop.permute.xlu0 %617  ;;  %v781_v58 = vsel %vm657_vm3, %v780_v53, %v776_v46  ;;  %v798_v43 = vsel %vm797_vm7, %v718_v14, %v679_v4 }
 0x197   : > { %v785_v6 = vrot.slane %v618_v2, %v2937_v55  ;;  %1170 = vbcast.lane.b32.xlu0 %v1168_v22, 256  ;;  %v790_v0 = vrot.slane %v621_v62, %v2930_v47  ;;  %v757_v55 = vsel %vm678_vm6, %v756_v42, %v752_v15  ;;  %v1196_v47 = vrot.slane %v2849_v48, %v2690_v34  ;;  %v827_v22 = vld [vmem:[%s3472_s3 + $0x38] sm:$0xff] }
 0x198   : > { %v800_v16 = vsel %vm799_vm8, %v757_v55, %v798_v43  ;;  %v1238_v3 = vrot.slane %v827_v22, %v2682_v30  ;;  %v1252_v29 = vrot.slane %v827_v22, %v2690_v34  ;;  %v1231_v31 = vrot.slane %v827_v22, %v2675_v26 }
 0x199   : > { %v786_v25 = vsel %vm664_vm4, %v785_v6, %v781_v58  ;;  %v1245_v38 = vrot.slane %v827_v22, %v2686_v32  ;;  %v1280_v30 = vrot.slane %v827_v22, %v2797_v18  ;;  %v1259_v39 = vrot.slane %v827_v22, %v2771_v5 }
 0x19a   : > { %v624_v10 = vpop.permute.xlu0 %623  ;;  %v791_v11 = vsel %vm671_vm5, %v790_v0, %v786_v25  ;;  %v3034_v28 = vpop.permute.xlu1 %897  ;;  %v1273_v26 = vrot.slane %v827_v22, %v2748_v54 }
 0x19b   : > { %v795_v17 = vrot.slane %v624_v10, %v2943_v61  ;;  %1184 = vbcast.lane.b32.xlu0 %v1182_v50, 256  ;;  %v1210_v61 = vrot.slane %v2849_v48, %v2788_v13  ;;  %v1266_v48 = vrot.slane %v827_v22, %v2788_v13 }
 0x19d   : > { %v796_v49 = vsel %vm678_vm6, %v795_v17, %v791_v11 }
 0x19e   : > { %v802_v19 = vsel %vm801_vm9, %v796_v49, %v800_v16  ;;  %v3024_v57 = vpop.permute.xlu0 %815  ;;  %v3039_v8 = vpop.permute.xlu1 %939 }
 0x19f   : > { %v805_v51 = vsel %vm804_vm10, %v802_v19, 0.0  ;;  %1198 = vbcast.lane.b32.xlu0 %v1196_v47, 256 }
 0x1a0   : > { %806 = vadd.xlane.f32.xlu1 %v805_v51 }
 0x1a2   : > { %v3031_v27 = vpop.permute.xlu0 %841  ;;  %v3044_v21 = vpop.permute.xlu1 %953 }
 0x1a3   : > { %1212 = vbcast.lane.b32.xlu0 %v1210_v61, 256 }
 0x1a6   : > { %v849_v24 = vpop.permute.xlu0 %848  ;;  %v3047_v13 = vpop.permute.xlu1 %967 }
 0x1a7   : > { %1226 = vbcast.lane.b32.xlu0 %v1224_v23, 256 }
 0x1aa   : > { %v856_v36 = vpop.permute.xlu0 %855  ;;  %v3049_v40 = vpop.permute.xlu1 %981 }
 0x1ab   : > { %1240 = vbcast.lane.b32.xlu0 %v1238_v3, 256 }
 0x1ae   : > { %v863_v34 = vpop.permute.xlu0 %862  ;;  %v3051_v41 = vpop.permute.xlu1 %995 }
 0x1af   : > { %1254 = vbcast.lane.b32.xlu0 %v1252_v29, 256 }
 0x1b1   : > { %1233 = vbcast.lane.b32.xlu1 %v1231_v31, 256 }
 0x1b2   : > { %v870_v20 = vpop.permute.xlu0 %869  ;;  %v3053_v52 = vpop.permute.xlu1 %1009 }
 0x1b3   : > { %1268 = vbcast.lane.b32.xlu0 %v1266_v48, 256 }
 0x1b5   : > { %1247 = vbcast.lane.b32.xlu1 %v1245_v38, 256 }
 0x1b6   : > { %v877_v32 = vpop.permute.xlu0 %876  ;;  %v3055_v56 = vpop.permute.xlu1 %1023 }
 0x1b7   : > { %1282 = vbcast.lane.b32.xlu0 %v1280_v30, 256 }
 0x1b9   : > { %1261 = vbcast.lane.b32.xlu1 %v1259_v39, 256 }
 0x1ba   : > { %v884_v18 = vpop.permute.xlu0 %883  ;;  %v3057_v35 = vpop.permute.xlu1 %1037 }
 0x1bd   : > { %1275 = vbcast.lane.b32.xlu1 %v1273_v26, 256 }
 0x1be   : > { %v891_v5 = vpop.permute.xlu0 %890  ;;  %v3059_v54 = vpop.permute.xlu1 %1051 }
 0x1c2   : > { %v905_v53 = vpop.permute.xlu0 %904  ;;  %v3061_v44 = vpop.permute.xlu1 %1065 }
 0x1c6   : > { %v912_v45 = vpop.permute.xlu0 %911  ;;  %v3063_v60 = vpop.permute.xlu1 %1079 }
 0x1ca   : > { %v919_v59 = vpop.permute.xlu0 %918  ;;  %v3065_v1 = vpop.permute.xlu1 %1093 }
 0x1ce   : > { %v926_v46 = vpop.permute.xlu0 %925  ;;  %v3067_v62 = vpop.permute.xlu1 %1107 }
 0x1d2   : > { %v933_v7 = vpop.permute.xlu0 %932  ;;  %v3069_v12 = vpop.permute.xlu1 %1121 }
 0x1d6   : > { %v947_v42 = vpop.permute.xlu0 %946  ;;  %v3071_v6 = vpop.permute.xlu1 %1135 }
 0x1da   : > { %v961_v2 = vpop.permute.xlu0 %960  ;;  %v3075_v9 = vpop.permute.xlu1 %1149 }
 0x1de   : > { %v975_v33 = vpop.permute.xlu0 %974  ;;  %v3079_v58 = vpop.permute.xlu1 %1163 }
 0x1e2   : > { %v3073_v50 = vpop.permute.xlu0 %988  ;;  %v3083_v15 = vpop.permute.xlu1 %1177 }
 0x1e6   : > { %v3077_v0 = vpop.permute.xlu0 %1002  ;;  %v3087_v63 = vpop.permute.xlu1 %1191 }
 0x1ea   : > { %v3081_v14 = vpop.permute.xlu0 %1016  ;;  %v3091_v10 = vpop.permute.xlu1 %1205 }
 0x1ee   : > { %v3085_v25 = vpop.permute.xlu0 %1030  ;;  %v3095_v17 = vpop.permute.xlu1 %1219 }
 0x1f2   : > { %v3089_v55 = vpop.permute.xlu0 %1044 }
 0x1f6   : > { %v3093_v4 = vpop.permute.xlu0 %1058 }
 0x1fa   : > { %v3097_v47 = vpop.permute.xlu0 %1072 }
 0x1fe   : > { %v3100_v49 = vpop.permute.xlu0 %1086 }
 0x202   : > { %v3107_v61 = vpop.permute.xlu0 %1100 }
 0x206   : > { %v3113_v29 = vpop.permute.xlu0 %1114 }
 0x20a   : > { %v1129_v31 = vpop.permute.xlu0 %1128 }
 0x20e   : > { %v3122_v39 = vpop.permute.xlu0 %1142 }
 0x22d   : > { %v807_v11 = vpop.xlane.xlu1 %806 }
 0x22e   : > { %v818_v43 = vadd.f32 %v3024_v57, %v807_v11 }
 0x230   : > { %v3102_v16 = vmax.f32 %v818_v43, 0.0 }
 0x232   : > { %v1348_v19 = vmul.f32 %v3031_v27, %v3102_v16  ;;  %v1349_v51 = vmul.f32 %v849_v24, %v3102_v16  ;;  %v1350_v23 = vmul.f32 %v856_v36, %v3102_v16  ;;  %v1351_v22 = vmul.f32 %v863_v34, %v3102_v16 }
 0x233   : > { %v1352_v57 = vmul.f32 %v870_v20, %v3102_v16  ;;  %v1353_v3 = vmul.f32 %v877_v32, %v3102_v16  ;;  %v1354_v27 = vmul.f32 %v884_v18, %v3102_v16  ;;  %v1355_v24 = vmul.f32 %v891_v5, %v3102_v16  ;;  %v3126_v20 = vpop.permute.xlu0 %1156 }
 0x234   : > { %1477 = vperm.xlu1 %2355, %v1348_v19   ;;  %1480 = vperm.xlu0 %2354, %v1349_v51   ;;  %v1356_v48 = vmul.f32 %v3034_v28, %v3102_v16  ;;  %v1357_v38 = vmul.f32 %v905_v53, %v3102_v16  ;;  %v1358_v36 = vmul.f32 %v912_v45, %v3102_v16 }
 0x235   : > { %v1359_v30 = vmul.f32 %v919_v59, %v3102_v16  ;;  %v1360_v34 = vmul.f32 %v926_v46, %v3102_v16  ;;  %v1361_v26 = vmul.f32 %v933_v7, %v3102_v16  ;;  %v1362_v28 = vmul.f32 %v3039_v8, %v3102_v16 }
 0x236   : > { %v1363_v32 = vmul.f32 %v947_v42, %v3102_v16  ;;  %v1364_v18 = vmul.f32 %v3044_v21, %v3102_v16  ;;  %v1365_v5 = vmul.f32 %v961_v2, %v3102_v16  ;;  %v1366_v45 = vmul.f32 %v3047_v13, %v3102_v16 }
 0x237   : > { %v3134_v53 = vpop.permute.xlu0 %1170  ;;  %v1367_v59 = vmul.f32 %v975_v33, %v3102_v16  ;;  %v1368_v46 = vmul.f32 %v3049_v40, %v3102_v16  ;;  %v1369_v21 = vmul.f32 %v3073_v50, %v3102_v16  ;;  %v1370_v7 = vmul.f32 %v3051_v41, %v3102_v16 }
 0x238   : > { %1483 = vperm.xlu1 %2355, %v1350_v23   ;;  %1486 = vperm.xlu0 %2354, %v1351_v22   ;;  %v1371_v42 = vmul.f32 %v3077_v0, %v3102_v16  ;;  %v1372_v2 = vmul.f32 %v3053_v52, %v3102_v16  ;;  %v1373_v40 = vmul.f32 %v3081_v14, %v3102_v16 }
 0x239   : > { %v1380_v50 = vmul.f32 %v3061_v44, %v3102_v16  ;;  %v1381_v41 = vmul.f32 %v3097_v47, %v3102_v16  ;;  %v1388_v0 = vmul.f32 %v3069_v12, %v3102_v16  ;;  %v1389_v11 = vmul.f32 %v1129_v31, %v3102_v16  ;;  %v1234_v44 = vpop.permute.xlu1 %1233 }
 0x23a   : > { %v1396_v14 = vmul.f32 %v3083_v15, %v3102_v16  ;;  %v1404_v19 = vmul.f32 %v1234_v44, %v3102_v16  ;;  %v1374_v12 = vmul.f32 %v3055_v56, %v3102_v16  ;;  %v1382_v23 = vmul.f32 %v3063_v60, %v3102_v16 }
 0x23b   : > { %v1185_v8 = vpop.permute.xlu0 %1184  ;;  %v1390_v15 = vmul.f32 %v3071_v6, %v3102_v16  ;;  %v1398_v22 = vmul.f32 %v3087_v63, %v3102_v16  ;;  %v1383_v56 = vmul.f32 %v3100_v49, %v3102_v16  ;;  %v1391_v60 = vmul.f32 %v3122_v39, %v3102_v16 }
 0x23c   : > { %1489 = vperm.xlu1 %2355, %v1352_v57   ;;  %1492 = vperm.xlu0 %2354, %v1353_v3   ;;  %v1397_v43 = vmul.f32 %v1185_v8, %v3102_v16  ;;  %v1384_v31 = vmul.f32 %v3065_v1, %v3102_v16  ;;  %v1392_v49 = vmul.f32 %v3075_v9, %v3102_v16 }
 0x23d   : > { %v1248_v57 = vpop.permute.xlu1 %1247  ;;  %v1393_v1 = vmul.f32 %v3126_v20, %v3102_v16 }
 0x23e   : > { %v1406_v3 = vmul.f32 %v1248_v57, %v3102_v16 }
 0x23f   : > { %v1199_v13 = vpop.permute.xlu0 %1198 }
 0x240   : > { %1495 = vperm.xlu1 %2355, %v1354_v27   ;;  %1498 = vperm.xlu0 %2354, %v1355_v24   ;;  %v1375_v27 = vmul.f32 %v3085_v25, %v3102_v16  ;;  %v1399_v6 = vmul.f32 %v1199_v13, %v3102_v16  ;;  %v1376_v25 = vmul.f32 %v3057_v35, %v3102_v16 }
 0x241   : > { %v1385_v35 = vmul.f32 %v3107_v61, %v3102_v16  ;;  %v1394_v61 = vmul.f32 %v3079_v58, %v3102_v16 }
 0x243   : > { %v1213_v33 = vpop.permute.xlu0 %1212 }
 0x244   : > { %1501 = vperm.xlu1 %2355, %v1356_v48   ;;  %1504 = vperm.xlu0 %2354, %v1357_v38   ;;  %v1400_v48 = vmul.f32 %v3091_v10, %v3102_v16  ;;  %v1262_v38 = vpop.permute.xlu1 %1261  ;;  %v1401_v10 = vmul.f32 %v1213_v33, %v3102_v16 }
 0x247   : > { %v3158_v52 = vpop.permute.xlu0 %1226 }
 0x248   : > { %1507 = vperm.xlu1 %2355, %v1358_v36   ;;  %1510 = vperm.xlu0 %2354, %v1359_v30   ;;  %v1408_v36 = vmul.f32 %v1262_v38, %v3102_v16  ;;  %v1377_v30 = vmul.f32 %v3089_v55, %v3102_v16  ;;  %v1378_v55 = vmul.f32 %v3059_v54, %v3102_v16  ;;  %v1276_v20 = vpop.permute.xlu1 %1275 }
 0x249   : > { %v1387_v54 = vmul.f32 %v3113_v29, %v3102_v16 }
 0x24b   : > { %v1241_v47 = vpop.permute.xlu0 %1240 }
 0x24c   : > { %1513 = vperm.xlu1 %2355, %v1360_v34   ;;  %1516 = vperm.xlu0 %2354, %v1361_v26   ;;  %v1405_v51 = vmul.f32 %v1241_v47, %v3102_v16  ;;  %v1386_v34 = vmul.f32 %v3067_v62, %v3102_v16  ;;  %v1402_v26 = vmul.f32 %v3095_v17, %v3102_v16 }
 0x24d   : > { %v1395_v62 = vmul.f32 %v3134_v53, %v3102_v16  ;;  %v1403_v17 = vmul.f32 %v3158_v52, %v3102_v16 }
 0x24f   : > { %v1255_v63 = vpop.permute.xlu0 %1254 }
 0x250   : > { %1519 = vperm.xlu1 %2355, %v1362_v28   ;;  %1522 = vperm.xlu0 %2354, %v1363_v32   ;;  %v1407_v24 = vmul.f32 %v1255_v63, %v3102_v16  ;;  %v1410_v28 = vmul.f32 %v1276_v20, %v3102_v16  ;;  %v1379_v32 = vmul.f32 %v3093_v4, %v3102_v16  ;;  %v3220_v4 = vld [vmem:[%s3473_s4] ss:$0 sm:$0xff] }
 0x253   : > { %v1269_v9 = vpop.permute.xlu0 %1268 }
 0x254   : > { %1525 = vperm.xlu1 %2355, %v1364_v18   ;;  %1528 = vperm.xlu0 %2354, %v1365_v5   ;;  %v1409_v39 = vmul.f32 %v1269_v9, %v3102_v16 }
 0x257   : > { %v1283_v58 = vpop.permute.xlu0 %1282 }
 0x258   : > { %1531 = vperm.xlu1 %2355, %v1366_v45   ;;  %1534 = vperm.xlu0 %2354, %v1367_v59   ;;  %v1411_v18 = vmul.f32 %v1283_v58, %v3102_v16 }
 0x25c   : > { %1537 = vperm.xlu1 %2355, %v1368_v46   ;;  %1540 = vperm.xlu0 %2354, %v1369_v21  }
 0x260   : > { %1543 = vperm.xlu1 %2355, %v1370_v7   ;;  %1546 = vperm.xlu0 %2354, %v1371_v42  }
 0x264   : > { %1549 = vperm.xlu1 %2355, %v1372_v2   ;;  %1552 = vperm.xlu0 %2354, %v1373_v40  }
 0x268   : > { %1573 = vperm.xlu1 %2355, %v1380_v50   ;;  %1576 = vperm.xlu0 %2354, %v1381_v41  }
 0x26c   : > { %1597 = vperm.xlu1 %2355, %v1388_v0   ;;  %1600 = vperm.xlu0 %2354, %v1389_v11  }
 0x270   : > { %1621 = vperm.xlu1 %2355, %v1396_v14   ;;  %1624 = vperm.xlu0 %2354, %v1397_v43  }
 0x274   : > { %1645 = vperm.xlu1 %2355, %v1404_v19   ;;  %1648 = vperm.xlu0 %2354, %v1405_v51  }
 0x278   : > { %1555 = vperm.xlu1 %2355, %v1374_v12   ;;  %1579 = vperm.xlu0 %2354, %v1382_v23  }
 0x27c   : > { %1603 = vperm.xlu1 %2355, %v1390_v15   ;;  %1627 = vperm.xlu0 %2354, %v1398_v22  }
 0x280   : > { %1651 = vperm.xlu1 %2355, %v1406_v3   ;;  %1558 = vperm.xlu0 %2354, %v1375_v27  }
 0x284   : > { %1582 = vperm.xlu1 %2355, %v1383_v56   ;;  %1606 = vperm.xlu0 %2354, %v1391_v60  }
 0x288   : > { %1630 = vperm.xlu1 %2355, %v1399_v6   ;;  %1654 = vperm.xlu0 %2354, %v1407_v24  }
 0x28c   : > { %1561 = vperm.xlu1 %2355, %v1376_v25   ;;  %1585 = vperm.xlu0 %2354, %v1384_v31  }
 0x290   : > { %1609 = vperm.xlu1 %2355, %v1392_v49   ;;  %1633 = vperm.xlu0 %2354, %v1400_v48  }
 0x294   : > { %1657 = vperm.xlu1 %2355, %v1408_v36   ;;  %1564 = vperm.xlu0 %2354, %v1377_v30  }
 0x298   : > { %1588 = vperm.xlu1 %2355, %v1385_v35   ;;  %1612 = vperm.xlu0 %2354, %v1393_v1  }
 0x29c   : > { %1636 = vperm.xlu1 %2355, %v1401_v10   ;;  %1660 = vperm.xlu0 %2354, %v1409_v39  }
 0x2a0   : > { %1567 = vperm.xlu1 %2355, %v1378_v55   ;;  %1591 = vperm.xlu0 %2354, %v1386_v34  }
 0x2a4   : > { %1615 = vperm.xlu1 %2355, %v1394_v61   ;;  %1639 = vperm.xlu0 %2354, %v1402_v26  }
 0x2a8   : > { %1663 = vperm.xlu1 %2355, %v1410_v28   ;;  %1570 = vperm.xlu0 %2354, %v1379_v32  }
 0x2ac   : > { %1594 = vperm.xlu1 %2355, %v1387_v54   ;;  %1618 = vperm.xlu0 %2354, %v1395_v62  }
 0x2b0   : > { %1642 = vperm.xlu1 %2355, %v1403_v17   ;;  %1666 = vperm.xlu0 %2354, %v1411_v18  }
 0x2b3   : > { %v1478_v5 = vpop.permute.xlu1 %1477  ;;  %v1481_v29 = vpop.permute.xlu0 %1480 }
 0x2b4   : > { %2028 = vbcast.lane.b32.xlu1 %v3220_v4, 264  ;;  %2024 = vbcast.lane.b32.xlu0 %v3220_v4, 256  ;;  %v1671_v50 = vrot.slane %v1478_v5, %v2920_v37  ;;  %v1675_v41 = vrot.slane %v1481_v29, %v2920_v37 }
 0x2b6   : > { %v1924_v19 = vsel %vm797_vm7, %v1675_v41, %v1671_v50 }
 0x2b7   : > { %v1484_v53 = vpop.permute.xlu1 %1483  ;;  %v1487_v45 = vpop.permute.xlu0 %1486 }
 0x2b8   : > { %2032 = vbcast.lane.b32.xlu1 %v3220_v4, 272  ;;  %2036 = vbcast.lane.b32.xlu0 %v3220_v4, 280  ;;  %v1679_v11 = vrot.slane %v1484_v53, %v2920_v37  ;;  %v1683_v51 = vrot.slane %v1487_v45, %v2920_v37 }
 0x2ba   : > { %v1925_v23 = vsel %vm799_vm8, %v1679_v11, %v1924_v19 }
 0x2bb   : > { %v1490_v16 = vpop.permute.xlu1 %1489  ;;  %v1493_v59 = vpop.permute.xlu0 %1492  ;;  %v1926_v60 = vsel %vm801_vm9, %v1683_v51, %v1925_v23 }
 0x2bc   : > { %2040 = vbcast.lane.b32.xlu1 %v3220_v4, 288  ;;  %2044 = vbcast.lane.b32.xlu0 %v3220_v4, 296  ;;  %v1687_v15 = vrot.slane %v1490_v16, %v2920_v37  ;;  %v1691_v24 = vrot.slane %v1493_v59, %v2920_v37 }
 0x2be   : > { %v1928_v63 = vsel %vm1927_vm11, %v1687_v15, %v1926_v60 }
 0x2bf   : > { %v1496_v8 = vpop.permute.xlu1 %1495  ;;  %v1499_v46 = vpop.permute.xlu0 %1498  ;;  %v1930_v1 = vsel %vm1929_vm12, %v1691_v24, %v1928_v63 }
 0x2c0   : > { %v1695_v48 = vrot.slane %v1496_v8, %v2920_v37  ;;  %v1699_v9 = vrot.slane %v1499_v46, %v2920_v37 }
 0x2c2   : > { %v1932_v26 = vsel %vm1931_vm13, %v1695_v48, %v1930_v1 }
 0x2c3   : > { %v1502_v21 = vpop.permute.xlu1 %1501  ;;  %v1505_v7 = vpop.permute.xlu0 %1504  ;;  %v1934_v58 = vsel %vm1933_vm14, %v1699_v9, %v1932_v26 }
 0x2c4   : > { %v1703_v13 = vrot.slane %v1502_v21, %v2920_v37  ;;  %v1707_v2 = vrot.slane %v1505_v7, %v2920_v37  ;;  %v1993_v53 = vsel %vm1992_vm15, %v1934_v58, 0.0 }
 0x2c6   : > { %v1935_v52 = vsel %vm797_vm7, %v1707_v2, %v1703_v13 }
 0x2c7   : > { %v1508_v42 = vpop.permute.xlu1 %1507  ;;  %v1511_v40 = vpop.permute.xlu0 %1510 }
 0x2c8   : > { %v1711_v33 = vrot.slane %v1508_v42, %v2920_v37  ;;  %v1715_v14 = vrot.slane %v1511_v40, %v2920_v37 }
 0x2ca   : > { %v1936_v44 = vsel %vm799_vm8, %v1711_v33, %v1935_v52 }
 0x2cb   : > { %v1514_v0 = vpop.permute.xlu1 %1513  ;;  %v1517_v43 = vpop.permute.xlu0 %1516  ;;  %v1937_v22 = vsel %vm801_vm9, %v1715_v14, %v1936_v44 }
 0x2cc   : > { %v1719_v47 = vrot.slane %v1514_v0, %v2920_v37  ;;  %v1723_v57 = vrot.slane %v1517_v43, %v2920_v37 }
 0x2ce   : > { %v1938_v27 = vsel %vm1927_vm11, %v1719_v47, %v1937_v22 }
 0x2cf   : > { %v1520_v12 = vpop.permute.xlu1 %1519  ;;  %v1523_v3 = vpop.permute.xlu0 %1522  ;;  %v1939_v25 = vsel %vm1929_vm12, %v1723_v57, %v1938_v27 }
 0x2d0   : > { %v1727_v56 = vrot.slane %v1520_v12, %v2920_v37  ;;  %v1731_v31 = vrot.slane %v1523_v3, %v2920_v37 }
 0x2d2   : > { %v1940_v30 = vsel %vm1931_vm13, %v1727_v56, %v1939_v25 }
 0x2d3   : > { %v1526_v6 = vpop.permute.xlu1 %1525  ;;  %v1529_v49 = vpop.permute.xlu0 %1528  ;;  %v1941_v55 = vsel %vm1933_vm14, %v1731_v31, %v1940_v30 }
 0x2d4   : > { %v1735_v38 = vrot.slane %v1526_v6, %v2920_v37  ;;  %v1739_v36 = vrot.slane %v1529_v49, %v2920_v37  ;;  %v1996_v32 = vsel %vm1992_vm15, %v1941_v55, 0.0 }
 0x2d6   : > { %v1942_v34 = vsel %vm797_vm7, %v1739_v36, %v1735_v38 }
 0x2d7   : > { %v1532_v35 = vpop.permute.xlu1 %1531  ;;  %v1535_v39 = vpop.permute.xlu0 %1534 }
 0x2d8   : > { %v1743_v10 = vrot.slane %v1532_v35, %v2920_v37  ;;  %v1747_v61 = vrot.slane %v1535_v39, %v2920_v37 }
 0x2da   : > { %v1943_v20 = vsel %vm799_vm8, %v1743_v10, %v1942_v34 }
 0x2db   : > { %v1538_v28 = vpop.permute.xlu1 %1537  ;;  %1997 = vadd.xlane.f32.xlu0 %v1996_v32  ;;  %v1541_v62 = vpop.permute.xlu0 %1540  ;;  %v1944_v17 = vsel %vm801_vm9, %v1747_v61, %v1943_v20 }
 0x2dc   : > { %v1751_v54 = vrot.slane %v1538_v28, %v2920_v37  ;;  %v1755_v18 = vrot.slane %v1541_v62, %v2920_v37 }
 0x2de   : > { %v1945_v5 = vsel %vm1927_vm11, %v1751_v54, %v1944_v17 }
 0x2df   : > { %v1544_v29 = vpop.permute.xlu1 %1543  ;;  %v1547_v16 = vpop.permute.xlu0 %1546  ;;  %v1946_v59 = vsel %vm1929_vm12, %v1755_v18, %v1945_v5 }
 0x2e0   : > { %v1759_v45 = vrot.slane %v1544_v29, %v2920_v37  ;;  %1994 = vadd.xlane.f32.xlu1 %v1993_v53  ;;  %v1763_v8 = vrot.slane %v1547_v16, %v2920_v37 }
 0x2e2   : > { %v1947_v46 = vsel %vm1931_vm13, %v1759_v45, %v1946_v59 }
 0x2e3   : > { %v1550_v21 = vpop.permute.xlu1 %1549  ;;  %v1948_v7 = vsel %vm1933_vm14, %v1763_v8, %v1947_v46  ;;  %v1553_v42 = vpop.permute.xlu0 %1552 }
 0x2e4   : > { %v1999_v13 = vsel %vm1992_vm15, %v1948_v7, 0.0  ;;  %v1767_v49 = vrot.slane %v1550_v21, %v2920_v37  ;;  %v1771_v48 = vrot.slane %v1553_v42, %v2920_v37 }
 0x2e5   : > { %2000 = vadd.xlane.f32.xlu0 %v1999_v13 }
 0x2e6   : > { %v1949_v28 = vsel %vm797_vm7, %v1771_v48, %v1767_v49 }
 0x2e7   : > { %v1574_v2 = vpop.permute.xlu1 %1573  ;;  %v1577_v40 = vpop.permute.xlu0 %1576 }
 0x2e8   : > { %v1799_v38 = vrot.slane %v1574_v2, %v2920_v37  ;;  %v1803_v36 = vrot.slane %v1577_v40, %v2920_v37 }
 0x2ea   : > { %v1956_v62 = vsel %vm797_vm7, %v1803_v36, %v1799_v38 }
 0x2eb   : > { %v1598_v33 = vpop.permute.xlu1 %1597  ;;  %v1601_v50 = vpop.permute.xlu0 %1600 }
 0x2ec   : > { %v1831_v30 = vrot.slane %v1598_v33, %v2920_v37  ;;  %v1835_v35 = vrot.slane %v1601_v50, %v2920_v37 }
 0x2ee   : > { %v1963_v58 = vsel %vm797_vm7, %v1835_v35, %v1831_v30 }
 0x2ef   : > { %v1622_v41 = vpop.permute.xlu1 %1621  ;;  %v1625_v0 = vpop.permute.xlu0 %1624 }
 0x2f0   : > { %v1863_v9 = vrot.slane %v1622_v41, %v2920_v37  ;;  %v1867_v10 = vrot.slane %v1625_v0, %v2920_v37 }
 0x2f2   : > { %v1970_v29 = vsel %vm797_vm7, %v1867_v10, %v1863_v9 }
 0x2f3   : > { %v1646_v11 = vpop.permute.xlu1 %1645  ;;  %v1649_v52 = vpop.permute.xlu0 %1648 }
 0x2f4   : > { %v1895_v39 = vrot.slane %v1646_v11, %v2920_v37  ;;  %v1899_v55 = vrot.slane %v1649_v52, %v2920_v37 }
 0x2f6   : > { %v1977_v53 = vsel %vm797_vm7, %v1899_v55, %v1895_v39 }
 0x2f7   : > { %v1556_v14 = vpop.permute.xlu1 %1555  ;;  %v1580_v43 = vpop.permute.xlu0 %1579 }
 0x2f8   : > { %v1775_v61 = vrot.slane %v1556_v14, %v2920_v37  ;;  %v1807_v26 = vrot.slane %v1580_v43, %v2920_v37 }
 0x2fa   : > { %v1950_v8 = vsel %vm799_vm8, %v1775_v61, %v1949_v28  ;;  %v1957_v46 = vsel %vm799_vm8, %v1807_v26, %v1956_v62 }
 0x2fb   : > { %v1604_v44 = vpop.permute.xlu1 %1603  ;;  %v1628_v47 = vpop.permute.xlu0 %1627 }
 0x2fc   : > { %v1839_v20 = vrot.slane %v1604_v44, %v2920_v37  ;;  %v1871_v32 = vrot.slane %v1628_v47, %v2920_v37 }
 0x2fe   : > { %v1964_v21 = vsel %vm799_vm8, %v1839_v20, %v1963_v58  ;;  %v1971_v42 = vsel %vm799_vm8, %v1871_v32, %v1970_v29 }
 0x2ff   : > { %v1652_v19 = vpop.permute.xlu1 %1651  ;;  %v1559_v51 = vpop.permute.xlu0 %1558 }
 0x300   : > { %v1903_v54 = vrot.slane %v1652_v19, %v2920_v37  ;;  %v1779_v17 = vrot.slane %v1559_v51, %v2920_v37 }
 0x302   : > { %v1978_v13 = vsel %vm799_vm8, %v1903_v54, %v1977_v53  ;;  %v1951_v33 = vsel %vm801_vm9, %v1779_v17, %v1950_v8 }
 0x303   : > { %v1583_v12 = vpop.permute.xlu1 %1582  ;;  %v1607_v23 = vpop.permute.xlu0 %1606 }
 0x304   : > { %v1811_v18 = vrot.slane %v1583_v12, %v2920_v37  ;;  %v1843_v45 = vrot.slane %v1607_v23, %v2920_v37 }
 0x306   : > { %v1958_v50 = vsel %vm801_vm9, %v1811_v18, %v1957_v46  ;;  %v1965_v52 = vsel %vm801_vm9, %v1843_v45, %v1964_v21 }
 0x307   : > { %v3276_v15 = vpop.permute.xlu1 %1630  ;;  %v3278_v22 = vpop.permute.xlu0 %1654 }
 0x308   : > { %v1875_v14 = vrot.slane %v3276_v15, %v2920_v37  ;;  %v1907_v19 = vrot.slane %v3278_v22, %v2920_v37 }
 0x30a   : > { %v1972_v10 = vsel %vm801_vm9, %v1875_v14, %v1971_v42 }
 0x30b   : > { %v1562_v57 = vpop.permute.xlu1 %1561  ;;  %v1586_v3 = vpop.permute.xlu0 %1585 }
 0x30c   : > { %v1783_v16 = vrot.slane %v1562_v57, %v2920_v37  ;;  %v1815_v2 = vrot.slane %v1586_v3, %v2920_v37 }
 0x30e   : > { %v1952_v43 = vsel %vm1927_vm11, %v1783_v16, %v1951_v33  ;;  %v1959_v57 = vsel %vm1927_vm11, %v1815_v2, %v1958_v50 }
 0x30f   : > { %v3280_v27 = vpop.permute.xlu1 %1609  ;;  %v3282_v56 = vpop.permute.xlu0 %1633 }
 0x310   : > { %v1847_v41 = vrot.slane %v3280_v27, %v2920_v37  ;;  %v1879_v15 = vrot.slane %v3282_v56, %v2920_v37 }
 0x312   : > { %v1973_v61 = vsel %vm1927_vm11, %v1879_v15, %v1972_v10 }
 0x313   : > { %v3284_v60 = vpop.permute.xlu1 %1657  ;;  %v1565_v6 = vpop.permute.xlu0 %1564 }
 0x314   : > { %v1787_v7 = vrot.slane %v1565_v6, %v2920_v37  ;;  %v1966_v6 = vsel %vm1927_vm11, %v1847_v41, %v1965_v52  ;;  %v1911_v22 = vrot.slane %v3284_v60, %v2920_v37 }
 0x316   : > { %v1953_v51 = vsel %vm1929_vm12, %v1787_v7, %v1952_v43 }
 0x317   : > { %v1589_v63 = vpop.permute.xlu1 %1588  ;;  %v3286_v24 = vpop.permute.xlu0 %1612 }
 0x318   : > { %v1819_v0 = vrot.slane %v1589_v63, %v2920_v37  ;;  %v1851_v44 = vrot.slane %v3286_v24, %v2920_v37 }
 0x31a   : > { %v1960_v63 = vsel %vm1929_vm12, %v1819_v0, %v1959_v57  ;;  %v1967_v48 = vsel %vm1929_vm12, %v1851_v44, %v1966_v6 }
 0x31b   : > { %v3288_v25 = vpop.permute.xlu1 %1636  ;;  %v3290_v31 = vpop.permute.xlu0 %1660 }
 0x31c   : > { %v1883_v38 = vrot.slane %v3288_v25, %v2920_v37  ;;  %v1915_v35 = vrot.slane %v3290_v31, %v2920_v37 }
 0x31e   : > { %v1974_v32 = vsel %vm1929_vm12, %v1883_v38, %v1973_v61 }
 0x31f   : > { %v1568_v1 = vpop.permute.xlu1 %1567  ;;  %v1592_v34 = vpop.permute.xlu0 %1591 }
 0x320   : > { %v1791_v40 = vrot.slane %v1568_v1, %v2920_v37  ;;  %v1823_v12 = vrot.slane %v1592_v34, %v2920_v37  ;;  %v1979_v34 = vsel %vm801_vm9, %v1907_v19, %v1978_v13 }
 0x321   : > { %v1980_v28 = vsel %vm1927_vm11, %v1911_v22, %v1979_v34 }
 0x322   : > { %v1954_v27 = vsel %vm1931_vm13, %v1791_v40, %v1953_v51  ;;  %v1961_v9 = vsel %vm1931_vm13, %v1823_v12, %v1960_v63  ;;  %v1981_v17 = vsel %vm1929_vm12, %v1915_v35, %v1980_v28 }
 0x323   : > { %v1616_v5 = vpop.permute.xlu1 %1615  ;;  %v1640_v59 = vpop.permute.xlu0 %1639 }
 0x324   : > { %v1855_v3 = vrot.slane %v1616_v5, %v2920_v37  ;;  %v1887_v60 = vrot.slane %v1640_v59, %v2920_v37 }
 0x326   : > { %v1968_v55 = vsel %vm1931_vm13, %v1855_v3, %v1967_v48  ;;  %v1975_v5 = vsel %vm1931_vm13, %v1887_v60, %v1974_v32 }
 0x327   : > { %v1664_v11 = vpop.permute.xlu1 %1663  ;;  %v1571_v47 = vpop.permute.xlu0 %1570 }
 0x328   : > { %v1795_v23 = vrot.slane %v1571_v47, %v2920_v37  ;;  %v1919_v39 = vrot.slane %v1664_v11, %v2920_v37 }
 0x32a   : > { %v1955_v49 = vsel %vm1933_vm14, %v1795_v23, %v1954_v27  ;;  %v1982_v53 = vsel %vm1931_vm13, %v1919_v39, %v1981_v17 }
 0x32b   : > { %v1595_v24 = vpop.permute.xlu1 %1594  ;;  %v1619_v36 = vpop.permute.xlu0 %1618  ;;  %v2002_v30 = vsel %vm1992_vm15, %v1955_v49, 0.0 }
 0x32c   : > { %v1827_v56 = vrot.slane %v1595_v24, %v2920_v37  ;;  %v1859_v1 = vrot.slane %v1619_v36, %v2920_v37  ;;  %2003 = vadd.xlane.f32.xlu1 %v2002_v30 }
 0x32e   : > { %v1962_v25 = vsel %vm1933_vm14, %v1827_v56, %v1961_v9  ;;  %v1969_v20 = vsel %vm1933_vm14, %v1859_v1, %v1968_v55 }
 0x32f   : > { %v1643_v31 = vpop.permute.xlu1 %1642  ;;  %v2005_v26 = vsel %vm1992_vm15, %v1962_v25, 0.0  ;;  %v1667_v62 = vpop.permute.xlu0 %1666  ;;  %v2008_v58 = vsel %vm1992_vm15, %v1969_v20, 0.0 }
 0x330   : > { %v1891_v54 = vrot.slane %v1643_v31, %v2920_v37  ;;  %2006 = vadd.xlane.f32.xlu0 %v2005_v26  ;;  %v1923_v18 = vrot.slane %v1667_v62, %v2920_v37  ;;  %2009 = vadd.xlane.f32.xlu1 %v2008_v58 }
 0x332   : > { %v1976_v29 = vsel %vm1933_vm14, %v1891_v54, %v1975_v5  ;;  %v1983_v16 = vsel %vm1933_vm14, %v1923_v18, %v1982_v53  ;;  %v2388_v18 = vld [vmem:[%s2649_s28 + $0x10] sm:$0xff] }
 0x333   : > { %v2011_v45 = vsel %vm1992_vm15, %v1976_v29, 0.0  ;;  %v2014_v59 = vsel %vm1992_vm15, %v1983_v16, 0.0  ;;  %v2025_v37 = vpop.permute.xlu0 %2024  ;;  %v2029_v8 = vpop.permute.xlu1 %2028  ;;  %v2389_v29 = vld [vmem:[%s2649_s28 + $0x18] sm:$0xff]  ;;  %v2390_v16 = vld [vmem:[%s2649_s28] sm:$0xff] }
 0x334   : > { %2012 = vadd.xlane.f32.xlu0 %v2011_v45  ;;  %2015 = vadd.xlane.f32.xlu1 %v2014_v59 }
 0x337   : > { %v2037_v46 = vpop.permute.xlu0 %2036  ;;  %v2033_v21 = vpop.permute.xlu1 %2032 }
 0x33b   : > { %v2045_v7 = vpop.permute.xlu0 %2044  ;;  %v2041_v42 = vpop.permute.xlu1 %2040 }
 0x345   : > { %2048 = vbcast.lane.b32.xlu1 %v3220_v4, 304 }
 0x34a   : > { %2052 = vbcast.lane.b32.xlu0 %v3220_v4, 312 }
 0x368   : > { %v1998_v13 = vpop.xlane.xlu0 %1997 }
 0x369   : > { %v2063_v2 = vadd.f32 %v2029_v8, %v1998_v13 }
 0x36b   : > { %v2289_v40 = vmul.f32 -1.442695, %v2063_v2 }
 0x36d   : > { %v1995_v33 = vpop.xlane.xlu1 %1994  ;;  %2356 = vpow2.f32 %v2289_v40  ;;  %v2394_v40 = vld [vmem:[%s2649_s28 + $0x30] sm:$0xff] }
 0x36e   : > { %v2062_v50 = vadd.f32 %v2025_v37, %v1995_v33  ;;  %v2391_v37 = vld [vmem:[%s2649_s28 + $0x8] sm:$0xff] }
 0x370   : > { %v2288_v41 = vmul.f32 -1.442695, %v2062_v50  ;;  %v2395_v50 = vld [vmem:[%s2649_s28 + $0x38] sm:$0xff] }
 0x372   : > { %2358 = vpow2.f32 %v2288_v41  ;;  %v2001_v0 = vpop.xlane.xlu0 %2000 }
 0x373   : > { %v2064_v11 = vadd.f32 %v2033_v21, %v2001_v0  ;;  %v2392_v21 = vld [vmem:[%s2649_s28 + $0x20] sm:$0xff] }
 0x375   : > { %v2290_v52 = vmul.f32 -1.442695, %v2064_v11  ;;  %v2396_v11 = vld [vmem:[%s2649_s28 + $0x40] sm:$0xff] }
 0x377   : > { %2360 = vpow2.f32 %v2290_v52  ;;  %v2357_v14 = vpop.eup %2356 }
 0x378   : > { %v2095_v4 = vadd.f32 1.0, %v2357_v14  ;;  %v2397_v14 = vld [vmem:[%s2649_s28 + $0x48] sm:$0xff] }
 0x37a   : > { %2362 = vrcp.f32 %v2095_v4 }
 0x37c   : > { %v2359_v43 = vpop.eup %2358 }
 0x37d   : > { %v2094_v44 = vadd.f32 1.0, %v2359_v43 }
 0x37f   : > { %2364 = vrcp.f32 %v2094_v44  ;;  %v2398_v44 = vld [vmem:[%s2649_s28 + $0x50] sm:$0xff] }
 0x381   : > { %v2361_v47 = vpop.eup %2360 }
 0x382   : > { %v2096_v19 = vadd.f32 1.0, %v2361_v47 }
 0x384   : > { %2366 = vrcp.f32 %v2096_v19  ;;  %v2363_v51 = vpop.eup %2362  ;;  %v2399_v19 = vld [vmem:[%s2649_s28 + $0x58] sm:$0xff] }
 0x385   : > { %2125 = vperm.xlu0 %2354, %v2363_v51  }
 0x389   : > { %v2365_v12 = vpop.eup %2364 }
 0x38a   : > { %2120 = vperm.xlu1 %2355, %v2365_v12  }
 0x38e   : > { %v2367_v23 = vpop.eup %2366 }
 0x38f   : > { %2130 = vperm.xlu1 %2355, %v2367_v23  }
 0x3b9   : > { %v2004_v57 = vpop.xlane.xlu1 %2003 }
 0x3ba   : > { %v2065_v15 = vadd.f32 %v2037_v46, %v2004_v57  ;;  %v2400_v57 = vld [vmem:[%s2649_s28 + $0x70] sm:$0xff] }
 0x3bc   : > { %v2291_v3 = vmul.f32 -1.442695, %v2065_v15 }
 0x3bd   : > { %v2007_v27 = vpop.xlane.xlu0 %2006  ;;  %v2010_v6 = vpop.xlane.xlu1 %2009 }
 0x3be   : > { %v2066_v22 = vadd.f32 %v2041_v42, %v2007_v27  ;;  %2368 = vpow2.f32 %v2291_v3  ;;  %v2067_v63 = vadd.f32 %v2045_v7, %v2010_v6  ;;  %v2393_v42 = vld [vmem:[%s2649_s28 + $0x28] sm:$0xff]  ;;  %v2401_v3 = vld [vmem:[%s2649_s28 + $0x78] sm:$0xff]  ;;  %v2402_v6 = vld [vmem:[%s2649_s28 + $0x60] sm:$0xff] }
 0x3c0   : > { %v2292_v24 = vmul.f32 -1.442695, %v2066_v22  ;;  %v2293_v49 = vmul.f32 -1.442695, %v2067_v63  ;;  %v2403_v63 = vld [vmem:[%s2649_s28 + $0x68] sm:$0xff] }
 0x3c1   : > { %v2013_v48 = vpop.xlane.xlu0 %2012  ;;  %v2016_v38 = vpop.xlane.xlu1 %2015 }
 0x3c2   : > { %2370 = vpow2.f32 %v2292_v24 }
 0x3c3   : > { %2372 = vpow2.f32 %v2293_v49 }
 0x3c5   : > { %v2053_v56 = vpop.permute.xlu0 %2052  ;;  %v2049_v36 = vpop.permute.xlu1 %2048 }
 0x3c6   : > { %v2069_v30 = vadd.f32 %v2053_v56, %v2016_v38  ;;  %v2068_v35 = vadd.f32 %v2049_v36, %v2013_v48 }
 0x3c8   : > { %v2295_v60 = vmul.f32 -1.442695, %v2069_v30  ;;  %v2369_v1 = vpop.eup %2368  ;;  %v2294_v9 = vmul.f32 -1.442695, %v2068_v35 }
 0x3c9   : > { %v2097_v10 = vadd.f32 1.0, %v2369_v1 }
 0x3ca   : > { %2374 = vpow2.f32 %v2295_v60 }
 0x3cb   : > { %2376 = vpow2.f32 %v2294_v9 }
 0x3cc   : > { %v2371_v39 = vpop.eup %2370  ;;  %2378 = vrcp.f32 %v2097_v10 }
 0x3cd   : > { %v2373_v25 = vpop.eup %2372  ;;  %v2098_v55 = vadd.f32 1.0, %v2371_v39 }
 0x3ce   : > { %v2099_v34 = vadd.f32 1.0, %v2373_v25 }
 0x3cf   : > { %2380 = vrcp.f32 %v2098_v55 }
 0x3d0   : > { %2382 = vrcp.f32 %v2099_v34 }
 0x3d4   : > { %v2375_v61 = vpop.eup %2374 }
 0x3d5   : > { %v2377_v31 = vpop.eup %2376  ;;  %v2101_v26 = vadd.f32 1.0, %v2375_v61 }
 0x3d6   : > { %v2379_v20 = vpop.eup %2378  ;;  %v2100_v28 = vadd.f32 1.0, %v2377_v31 }
 0x3d7   : > { %2384 = vrcp.f32 %v2101_v26  ;;  %2135 = vperm.xlu0 %2354, %v2379_v20  }
 0x3d8   : > { %2386 = vrcp.f32 %v2100_v28 }
 0x3d9   : > { %v2381_v32 = vpop.eup %2380 }
 0x3da   : > { %v2383_v54 = vpop.eup %2382  ;;  %2140 = vperm.xlu1 %2355, %v2381_v32  }
 0x3db   : > { %2145 = vperm.xlu0 %2354, %v2383_v54  }
 0x3e1   : > { %v2385_v62 = vpop.eup %2384 }
 0x3e2   : > { %v2387_v58 = vpop.eup %2386  ;;  %2155 = vperm.xlu0 %2354, %v2385_v62  }
 0x3e3   : > { %2150 = vperm.xlu1 %2355, %v2387_v58  }
 0x404   : > { %v2126_v17 = vpop.permute.xlu0 %2125 }
 0x405   : > { %v2160_v5 = vmul.f32 %v2388_v18, %v2126_v17  ;;  %v2161_v53 = vmul.f32 %v2389_v29, %v2126_v17 }
 0x407   : > { %2176 = vst [vmem:[%s3386_s11 + $0x10] sm:$0xff] %v2160_v5  ;;  %2177 = vst [vmem:[%s3386_s11 + $0x18] sm:$0xff] %v2161_v53 }
 0x409   : > { %v2121_v45 = vpop.permute.xlu1 %2120 }
 0x40a   : > { %v2158_v59 = vmul.f32 %v2390_v16, %v2121_v45  ;;  %v2159_v8 = vmul.f32 %v2391_v37, %v2121_v45 }
 0x40c   : > { %2174 = vst [vmem:[%s3386_s11] sm:$0xff] %v2158_v59  ;;  %2175 = vst [vmem:[%s3386_s11 + $0x8] sm:$0xff] %v2159_v8 }
 0x40e   : > { %v2131_v46 = vpop.permute.xlu1 %2130 }
 0x40f   : > { %v2162_v7 = vmul.f32 %v2392_v21, %v2131_v46  ;;  %v2163_v13 = vmul.f32 %v2393_v42, %v2131_v46 }
 0x411   : > { %2178 = vst [vmem:[%s3386_s11 + $0x20] sm:$0xff] %v2162_v7  ;;  %2179 = vst [vmem:[%s3386_s11 + $0x28] sm:$0xff] %v2163_v13 }
 0x456   : > { %v2136_v2 = vpop.permute.xlu0 %2135 }
 0x457   : > { %v2164_v33 = vmul.f32 %v2394_v40, %v2136_v2  ;;  %v2165_v41 = vmul.f32 %v2395_v50, %v2136_v2 }
 0x459   : > { %2180 = vst [vmem:[%s3386_s11 + $0x30] sm:$0xff] %v2164_v33  ;;  %2181 = vst [vmem:[%s3386_s11 + $0x38] sm:$0xff] %v2165_v41  ;;  %v2141_v0 = vpop.permute.xlu1 %2140 }
 0x45a   : > { %v2166_v52 = vmul.f32 %v2396_v11, %v2141_v0  ;;  %v2167_v4 = vmul.f32 %v2397_v14, %v2141_v0  ;;  %v2146_v43 = vpop.permute.xlu0 %2145 }
 0x45b   : > { %v2168_v47 = vmul.f32 %v2398_v44, %v2146_v43  ;;  %v2169_v51 = vmul.f32 %v2399_v19, %v2146_v43 }
 0x45c   : > { %2182 = vst [vmem:[%s3386_s11 + $0x40] sm:$0xff] %v2166_v52  ;;  %2183 = vst [vmem:[%s3386_s11 + $0x48] sm:$0xff] %v2167_v4 }
 0x45d   : > { %2184 = vst [vmem:[%s3386_s11 + $0x50] sm:$0xff] %v2168_v47  ;;  %2185 = vst [vmem:[%s3386_s11 + $0x58] sm:$0xff] %v2169_v51 }
 0x461   : > { %v2156_v12 = vpop.permute.xlu0 %2155 }
 0x462   : > { %v2151_v23 = vpop.permute.xlu1 %2150  ;;  %v2172_v15 = vmul.f32 %v2400_v57, %v2156_v12  ;;  %v2173_v27 = vmul.f32 %v2401_v3, %v2156_v12 }
 0x463   : > { %v2170_v22 = vmul.f32 %v2402_v6, %v2151_v23  ;;  %v2171_v24 = vmul.f32 %v2403_v63, %v2151_v23 }
 0x464   : > { %2188 = vst [vmem:[%s3386_s11 + $0x70] sm:$0xff] %v2172_v15  ;;  %2189 = vst [vmem:[%s3386_s11 + $0x78] sm:$0xff] %v2173_v27 }
 0x465   : > { %2186 = vst [vmem:[%s3386_s11 + $0x60] sm:$0xff] %v2170_v22  ;;  %2187 = vst [vmem:[%s3386_s11 + $0x68] sm:$0xff] %v2171_v24 }
 0x466   : > { %2447 = shalt.err (!%p2444_p2)
}
 0x467   : > { %s2448_s28 = scalar_lea.hbm %s3417_s29, 2048  ;;  %s2452_s9 = scalar_lea.hbm %s3474_s5, 4096 }
 0x468   : > { %p2449_p4 = scmp.ne.s32.totalorder %s3417_s29, %s2448_s28  ;;  %p2453_p9 = scmp.lt.u32.totalorder %s3417_s29, %s3474_s5 }
 0x469   : > { %p2454_p1 = scmp.lt.u32.totalorder %s2452_s9, %s2448_s28  ;;  %p2456_p6 = scmp.lt.u32.totalorder %s2448_s28, %s3417_s29 }
 0x46a   : > { %p2450_p5 = pnand %p2449_p4, %p3481_p11 }
 0x46b   : > { %p2455_p3 = por %p2454_p1, %p2453_p9 }
 0x46c   : > { %p2451_p7 = pneg %p2450_p5 }
 0x46d   : > { %p2457_p12 = por %p2456_p6, %p2455_p3 }
 0x46f   : > { %p2458_p13 = pnand %p2457_p12, %p2451_p7 }
 0x471   : > { %2461 = shalt.err (!%p2458_p13)
}
 0x472   : > { %s2507_s25 = smov 256   ;;  %s2508_s17 = smov 16  }
 0x473   : > { %2305 = dma.vmem_to_hbm [thread:$0]  (%p3481_p11), %s3419_s13, 2048, %s3417_s29, %s2191_s22, %s2507_s25, %s2507_s25, %s2508_s17  }
 0x474 PF: > { %s2219_s26 = sand.u32 1, %s2488_s18   ;;  %p3482_p8 = scmp.ne.s32.totalorder %s3479_s6, 0 }
 0x475   : > { %p3483_p10 = scmp.ge.s32.totalorder %s2500_s21, 2  ;;  %s2220_s12 = scalar_lea.sflag [#allocation4], %s2219_s26 }
 0x477   : > { %p2312_p0 = pnand %p3483_p10, %p3482_p8 }
 0x479   : > { %2483 = dma.done.wait (!%p2312_p0), %s2220_s12, 2048  }
 0x47a   : > { %2485 = vsyncadd (!%p2312_p0), %s2220_s12, 4294965248  ;;  %p18_p2 = scmp.ge.s32.totalorder %s2564_s24, 4   ;;  %s3484_s18 = smov %s2492_s19 }
 0x47b   : > { %s3485_s19 = smov %s2496_s20  ;;  %s3486_s20 = smov %s2576_s27 }
 0x47c   : > { %s3487_s21 = smov %s2564_s24  ;;  %20 = sbr.rel (!%p18_p2) target bundleno = 5 (0x5), region = 85 }
 0x483   :  { %2225 = vsyncpa [#allocation3], 1 }
 0x484   :  { %2227 = vsyncpa [#allocation3 + $0x1], 1 }
 0x485   :  { %2228 = vsyncpa [#allocation4], 1 }
 0x486   :  { %2230 = vsyncpa [#allocation4 + $0x1], 1 }

</bundles_post_ra>
